<compile_context>
chip_gen: v5e
topology: v5e:2x2
jax: 0.10.0
libtpu: 0.0.40
codegen_flags: <defaults>
</compile_context>

<pallas_src>
import jax
import jax.numpy as jnp
from jax.experimental import pallas as pl
from jax.experimental.pallas import tpu as pltpu

LANE = 128                          # vreg lane width
SUBLANE = 8                         # f32 sublane tile
_TARGET_OUT_BLOCK_BYTES = 8 << 20   # ~8 MiB of output per grid step
_MAX_TILE_ROWS = 1024               # review: don't chase 2048-row tiles


def _make_rbf_kernel(neg_inv_std_sq):
    neg_inv_std_sq = float(neg_inv_std_sq)

    def kernel(e_ref, c_ref, x_ref, o_ref):
        # e_ref: (128, 128*n_bins) bf16 one-hot expansion matrix (grid-invariant)
        # c_ref: (1,   128*n_bins) f32 lane-periodic centers     (grid-invariant)
        # x_ref: (tile_rows, 128)  f32 input tile
        # o_ref: (tile_rows, 128*n_bins) lane-dense output tile
        x = x_ref[...]
        e = e_ref[...]
        # Exact 3-way bf16 decomposition of f32 x:  x == x1 + x2 + x3.
        # Each dot selects one bf16 chunk exactly (weights are 0/1, f32 acc),
        # so xe is bit-exact x expanded along lanes, using 3 MXU passes.
        x1 = x.astype(jnp.bfloat16)
        r1 = x - x1.astype(jnp.float32)
        x2 = r1.astype(jnp.bfloat16)
        r2 = r1 - x2.astype(jnp.float32)
        x3 = r2.astype(jnp.bfloat16)
        xe = (jnp.dot(x1, e, preferred_element_type=jnp.float32)
              + jnp.dot(x2, e, preferred_element_type=jnp.float32)
              + jnp.dot(x3, e, preferred_element_type=jnp.float32))
        # exp(-((xe - c) * inv_std)^2) == exp((d * -inv_std^2) * d): 3 VPU ops.
        d = xe - c_ref[...]
        o_ref[...] = jnp.exp((d * neg_inv_std_sq) * d).astype(o_ref.dtype)

    return kernel


def rbf_pallas(x, v_min, v_max, n_bins, out_dtype=None):
    orig_shape = x.shape
    out_dtype = x.dtype if out_dtype is None else jnp.dtype(out_dtype)
    n_bins = int(n_bins)
    v_min = float(v_min)
    v_max = float(v_max)

    rbf_std = (v_max - v_min) / n_bins
    # Same failure mode as the torch formula when v_max == v_min (NaN output).
    inv_std = (1.0 / rbf_std) if rbf_std != 0.0 else float("inf")
    neg_inv_std_sq = -(inv_std * inv_std)

    flat = x.reshape(-1).astype(jnp.float32)
    n = flat.shape[0]

    # Pad only to a full slab row (multiple of 128 elements).  No pad and no
    # post-kernel slice whenever n % 128 == 0 (the common case).
    rows = (n + LANE - 1) // LANE
    padded = rows * LANE
    if padded != n:
        flat = jnp.pad(flat, (0, padded - n))
    cols = LANE * n_bins
    x2d = flat.reshape(rows, LANE)

    # Grid-invariant constants (DMA'd to VMEM once via constant index_maps).
    centers = jnp.linspace(v_min, v_max, n_bins, dtype=jnp.float32)
    centers_lane = jnp.tile(centers, LANE).reshape(1, cols)       # centers[c % n_bins]
    # E[l, c] = 1 iff c // n_bins == l  (0/1 exact in bf16)
    expand = jnp.repeat(jnp.eye(LANE, dtype=jnp.float32), n_bins, axis=1
                        ).astype(jnp.bfloat16)

    # Tile sizing: ~8 MiB of f32 output per grid step, multiple of 8 sublanes,
    # capped at 1024 rows (v7x VMEM headroom).  When rows > 8, clamp so the
    # grid has at least 2 steps (both v7x TCs busy; pipeline overlap).
    target_rows = (_TARGET_OUT_BLOCK_BYTES // (cols * 4)) // SUBLANE * SUBLANE
    tile_rows = int(max(SUBLANE, min(_MAX_TILE_ROWS, target_rows)))
    if rows <= SUBLANE:
        tile_rows = rows                       # single full-array block
    else:
        half_rows = max(SUBLANE, (rows // 2) // SUBLANE * SUBLANE)
        tile_rows = min(tile_rows, half_rows)  # guarantees grid >= 2
    grid = (pl.cdiv(rows, tile_rows),)

    out_itemsize = jnp.dtype(out_dtype).itemsize
    cost = pl.CostEstimate(
        flops=int(3 * 2 * rows * LANE * cols + 5 * rows * cols),
        transcendentals=int(rows * cols),
        bytes_accessed=int(rows * LANE * 4              # input
                           + LANE * cols * 2            # bf16 expansion matrix
                           + cols * 4                   # centers
                           + rows * cols * out_itemsize),   # output
    )

    out2d = pl.pallas_call(
        _make_rbf_kernel(neg_inv_std_sq),
        out_shape=jax.ShapeDtypeStruct((rows, cols), out_dtype),
        grid_spec=pltpu.PrefetchScalarGridSpec(
            num_scalar_prefetch=0,
            grid=grid,
            in_specs=[
                pl.BlockSpec((LANE, cols), lambda i: (0, 0)),        # one-hot expansion
                pl.BlockSpec((1, cols), lambda i: (0, 0)),           # lane-periodic centers
                pl.BlockSpec((tile_rows, LANE), lambda i: (i, 0)),   # input slab tile
            ],
            out_specs=pl.BlockSpec((tile_rows, cols), lambda i: (i, 0)),
        ),
        compiler_params=pltpu.CompilerParams(
            dimension_semantics=("parallel",),           # shards across TCs on v7x
            vmem_limit_bytes=40 * 1024 * 1024,
        ),
        cost_estimate=cost,
    )(expand, centers_lane, x2d)

    # (rows, 128*n_bins) row-major == (element, bin) row-major -> free reshape.
    out = out2d.reshape(rows * LANE, n_bins)
    if padded != n:
        out = out[:n]                                    # only when n % 128 != 0
    return out.reshape(*orig_shape, n_bins)


def rbf_reference(x, v_min, v_max, n_bins):
    centers = jnp.linspace(v_min, v_max, n_bins, dtype=x.dtype)
    centers = centers.reshape((1,) * x.ndim + (-1,))
    std = (v_max - v_min) / n_bins
    z = (x[..., None] - centers) / std
    return jnp.exp(-(z ** 2))


if __name__ == "__main__":
    # config.rbf_params = (v_min, v_max, n_bins)
    v_min, v_max, n_bins = 0.0, 20.0, 16

    key = jax.random.PRNGKey(0)
    x = jax.random.uniform(key, (2, 4, 16, 16), dtype=jnp.float32,
                           minval=-2.0, maxval=22.0)

    out = rbf_pallas(x, v_min, v_max, n_bins)
    out = jax.block_until_ready(out)

    ref = rbf_reference(x, v_min, v_max, n_bins)
    assert out.shape == (2, 4, 16, 16, n_bins), out.shape
    assert jnp.allclose(out, ref, atol=1e-5, rtol=1e-5), float(
        jnp.max(jnp.abs(out - ref)))

    # Ragged element count (exercises the pad + masked-last-block path).
    x2 = jax.random.uniform(jax.random.PRNGKey(1), (3, 5, 7), dtype=jnp.float32,
                            minval=-2.0, maxval=22.0)
    out2 = jax.block_until_ready(rbf_pallas(x2, v_min, v_max, n_bins))
    ref2 = rbf_reference(x2, v_min, v_max, n_bins)
    assert out2.shape == (3, 5, 7, n_bins), out2.shape
    assert jnp.allclose(out2, ref2, atol=1e-5, rtol=1e-5), float(
        jnp.max(jnp.abs(out2 - ref2)))

    print("KERNEL_OK")
</pallas_src>

<mosaic_0001>
module attributes {stable_mosaic.version = 11 : i64} {
  func.func @kernel(%arg0: i32, %arg1: memref<128x2048xbf16, #tpu.memory_space<vmem>>, %arg2: memref<1x2048xf32, #tpu.memory_space<vmem>>, %arg3: memref<8x128xf32, #tpu.memory_space<vmem>>, %arg4: memref<8x2048xf32, #tpu.memory_space<vmem>>) attributes {dimension_semantics = [#tpu.dimension_semantics<parallel>], iteration_bounds = array<i64: 2>, scalar_prefetch = 0 : i64, scratch_operands = 0 : i64, tpu.core_type = #tpu.core_type<tc>, window_params = [{pipeline_mode = #tpu.pipeline_mode<synchronous>, transform_indices = @transform_0, window_bounds = array<i64: 128, 2048>}, {pipeline_mode = #tpu.pipeline_mode<synchronous>, transform_indices = @transform_1, window_bounds = array<i64: 1, 2048>}, {transform_indices = @transform_2, window_bounds = array<i64: 8, 128>}, {transform_indices = @transform_3, window_bounds = array<i64: 8, 2048>}]} {
    %c0 = arith.constant 0 : index
    %c0_0 = arith.constant 0 : index
    %0 = vector.load %arg3[%c0, %c0_0] : memref<8x128xf32, #tpu.memory_space<vmem>>, vector<8x128xf32>
    %c0_1 = arith.constant 0 : index
    %c0_2 = arith.constant 0 : index
    %1 = vector.load %arg1[%c0_1, %c0_2] : memref<128x2048xbf16, #tpu.memory_space<vmem>>, vector<128x2048xbf16>
    %2 = arith.truncf %0 : vector<8x128xf32> to vector<8x128xbf16>
    %3 = arith.extf %2 : vector<8x128xbf16> to vector<8x128xf32>
    %4 = arith.subf %0, %3 : vector<8x128xf32>
    %5 = arith.truncf %4 : vector<8x128xf32> to vector<8x128xbf16>
    %6 = arith.extf %5 : vector<8x128xbf16> to vector<8x128xf32>
    %7 = arith.subf %4, %6 : vector<8x128xf32>
    %8 = arith.truncf %7 : vector<8x128xf32> to vector<8x128xbf16>
    %cst = arith.constant dense<0.000000e+00> : vector<8x2048xf32>
    %9 = tpu.matmul %2, %1, %cst {dimension_numbers = #tpu.dot_dimension_numbers<[1], [0], [0], [1], [0, 0, 1, 1], [], []>} : vector<8x128xbf16>, vector<128x2048xbf16>, vector<8x2048xf32> -> vector<8x2048xf32>
    %cst_3 = arith.constant dense<0.000000e+00> : vector<8x2048xf32>
    %10 = tpu.matmul %5, %1, %cst_3 {dimension_numbers = #tpu.dot_dimension_numbers<[1], [0], [0], [1], [0, 0, 1, 1], [], []>} : vector<8x128xbf16>, vector<128x2048xbf16>, vector<8x2048xf32> -> vector<8x2048xf32>
    %11 = arith.addf %9, %10 : vector<8x2048xf32>
    %cst_4 = arith.constant dense<0.000000e+00> : vector<8x2048xf32>
    %12 = tpu.matmul %8, %1, %cst_4 {dimension_numbers = #tpu.dot_dimension_numbers<[1], [0], [0], [1], [0, 0, 1, 1], [], []>} : vector<8x128xbf16>, vector<128x2048xbf16>, vector<8x2048xf32> -> vector<8x2048xf32>
    %13 = arith.addf %11, %12 : vector<8x2048xf32>
    %c0_5 = arith.constant 0 : index
    %c0_6 = arith.constant 0 : index
    %14 = vector.load %arg2[%c0_5, %c0_6] : memref<1x2048xf32, #tpu.memory_space<vmem>>, vector<1x2048xf32>
    %15 = vector.broadcast %14 : vector<1x2048xf32> to vector<8x2048xf32>
    %16 = arith.subf %13, %15 : vector<8x2048xf32>
    %cst_7 = arith.constant -6.400000e-01 : f32
    %17 = vector.broadcast %cst_7 : f32 to vector<8x2048xf32>
    %18 = arith.mulf %16, %17 : vector<8x2048xf32>
    %19 = arith.mulf %18, %16 : vector<8x2048xf32>
    %20 = math.exp %19 : vector<8x2048xf32>
    %c0_8 = arith.constant 0 : index
    %c0_9 = arith.constant 0 : index
    %21 = vector.load %arg4[%c0_8, %c0_9] : memref<8x2048xf32, #tpu.memory_space<vmem>>, vector<8x2048xf32>
    tpu.vector_store %arg4[%c0_8, %c0_9], %20 {strides = array<i32>} : memref<8x2048xf32, #tpu.memory_space<vmem>>, vector<8x2048xf32>,
    return
  }
  func.func @transform_0(%arg0: i32) -> (i32, i32) {
    %c0_i32 = arith.constant 0 : i32
    %c0_i32_0 = arith.constant 0 : i32
    %c0_i32_1 = arith.constant 0 : i32
    return %c0_i32, %c0_i32_0 : i32, i32
  }
  func.func @transform_1(%arg0: i32) -> (i32, i32) {
    %c0_i32 = arith.constant 0 : i32
    %c0_i32_0 = arith.constant 0 : i32
    %c0_i32_1 = arith.constant 0 : i32
    return %c0_i32, %c0_i32_0 : i32, i32
  }
  func.func @transform_2(%arg0: i32) -> (i32, i32) {
    %c0_i32 = arith.constant 0 : i32
    %c0_i32_0 = arith.constant 0 : i32
    return %arg0, %c0_i32 : i32, i32
  }
  func.func @transform_3(%arg0: i32) -> (i32, i32) {
    %c0_i32 = arith.constant 0 : i32
    %c0_i32_0 = arith.constant 0 : i32
    return %arg0, %c0_i32 : i32, i32
  }
}

</mosaic_0001>

<bundles_post_ra>
// kernel: tpu_custom_call.1
= control target key start
LH: loop header
LB: loop body
LE: loop exit
PB: predicated region body
PF: predicated region fallthrough
CT: control target
= control target key end

     0   :  { %8 = vsyncpa [#allocation3], 0  ;;  %s3812_s0 = inlined_call_operand.hbm [shape: bf16[128,2048], index: 0, kind: input, shape index: {}]   ;;  %s3813_s1 = inlined_call_operand.hbm [shape: f32[1,2048], index: 1, kind: input, shape index: {}]   ;;  %s3814_s2 = inlined_call_operand.hbm [shape: f32[16,128], index: 2, kind: input, shape index: {}]   ;;  %s3815_s3 = inlined_call_operand.hbm [shape: f32[16,2048], index: 3, kind: output, shape index: {}]  }
   0x1   :  { %9 = vsyncpa [#allocation6], 0 }
   0x2   :  { %10 = vsyncpa [#allocation4], 0 }
   0x3   :  { %12 = vsyncpa [#allocation4 + $0x1], 0  ;;  %s2820_s12 = smov 0   ;;  %s2822_s13 = smov 0  }
   0x4   :  { %s2824_s14 = smov 0   ;;  %s2826_s15 = smov 0  }
   0x5 LB: > { %s128_s18 = sshll.u32 %s3812_s0, 4  ;;  %s2844_s19 = sadd.s32 4294967295, %s2794_s15   ;;  %s2794_s15 = sphi %s2826_s15, %s4245_s15   ;;  %s2790_s14 = sphi %s2824_s14, %s4244_s14   ;;  %s2786_s13 = sphi %s2822_s13, %s4243_s13   ;;  %s2782_s12 = sphi %s2820_s12, %s4242_s12   ;;  %s129_s18 = int_to_ptr.hbm [resolvable:$true] %s128_s18 }
   0x6   : > { %p1872_p0 = scmp.ge.s32.totalorder %s2794_s15, 1  ;;  %p81_p1 = scmp.eq.s32.totalorder %s2844_s19, 0 }
   0x7   : > { %p104_p2 = scmp.eq.s32.totalorder %s2844_s19, 1  ;;  %p117_p3 = scmp.lt.s32.totalorder %s2794_s15, 3 }
   0x8   : > { %s2796_s21 = smov [#allocation2]   ;;  %s143_s25 = sshll.u32 %s3813_s1, 4  ;;  %s144_s25 = int_to_ptr.hbm [resolvable:$true] %s143_s25 }
   0x9   : > { %p2850_p4 = pnand %p1872_p0, %p117_p3  ;;  %s130_s22 = sshll.u32 %s2796_s21, 4  ;;  %s131_s22 = int_to_ptr.vmem [resolvable:$true] %s130_s22 }
   0xa   : > { %s2797_s26 = smov [#allocation5]   ;;  %s2798_s28 = smov 1024  }
   0xb   : > { %p2541_p5 = pneg %p2850_p4  ;;  %s145_s27 = sshll.u32 %s2797_s26, 4  ;;  %s146_s27 = int_to_ptr.vmem [resolvable:$true] %s145_s27 }
   0xc   : > { %s2799_s29 = smov 64   ;;  %s1871_s30 = sadd.s32 4294967294, %s2794_s15  }
   0xd   : > { %p2542_p7 = pnand %p2541_p5, %p81_p1  ;;  %s2864_s4 = sadd.s32 1, %s2794_s15  }
   0xe   : > { %s67_s5 = sadd.s32 1, %s2790_s14  ;;  %s64_s6 = ssub.s32 %s2794_s15, %s2864_s4 }
   0xf   : > { %2544 = dma.hbm_to_vmem [thread:$0]  (!%p2542_p7), %s129_s18, 16384, %s131_s22, [#allocation3], %s2798_s28, %s2798_s28, %s2799_s29  }
  0x10   : > { %2547 = dma.hbm_to_vmem [thread:$0]  (!%p2542_p7), %s144_s25, 256, %s146_s27, [#allocation6]  }
  0x11   : > { %p74_p8 = scmp.ne.s32.totalorder %s2790_s14, %s2786_s13  ;;  %p65_p9 = scmp.eq.s32.totalorder %s64_s6, 0 }
  0x12   : > { %p75_p10 = scmp.eq.s32.totalorder %s2794_s15, 0  ;;  %p80_p11 = scmp.ne.s32.totalorder %s2786_s13, %s2782_s12 }
  0x13   : > { %p2876_p12 = por %p104_p2, %p74_p8  ;;  %p110_p3 = scmp.eq.s32.totalorder %s1871_s30, 1 }
  0x14   : > { %s2881_s8 = scalar_select %p65_p9, %s2790_s14, %s67_s5  }
  0x15   : > { %p2885_p13 = por %p81_p1, %p80_p11  ;;  %p2889_p0 = por %p75_p10, %p74_p8 }
  0x16   : > { %p2558_p5 = scmp.lt.s32.totalorder %s2794_s15, 2  ;;  %s158_s11 = sand.u32 1, %s2790_s14  }
  0x17   : > { %p2895_p7 = por %p110_p3, %p80_p11  ;;  %s156_s17 = sand.u32 1, %s2794_s15  }
  0x18   : > { %s1876_s18 = sshll.u32 %s158_s11, 3  ;;  %s1877_s21 = sshll.u32 %s2794_s15, 3 }
  0x19   : > { %s164_s24 = scalar_lea.hbm %s3814_s2, %s1877_s21  ;;  %s160_s26 = scalar_lea.vmem [#allocation7], %s1876_s18 }
  0x1a   : > { %s166_s25 = sshll.u32 %s164_s24, 4  ;;  %s168_s27 = sshll.u32 %s160_s26, 4  ;;  %s167_s25 = int_to_ptr.hbm [resolvable:$true] %s166_s25  ;;  %s169_s27 = int_to_ptr.vmem [resolvable:$true] %s168_s27 }
  0x1b   : > { %p2906_p2 = pnand %p2558_p5, %p2889_p0  ;;  %s157_s29 = scalar_lea.sflag [#allocation3], %s156_s17 }
  0x1c   : > { %s2690_s30 = sshra.s32 %s167_s25, 4  ;;  %s2697_s18 = scalar_lea.hbm %s3814_s2, 16  ;;  %s2691_s30 = int_to_ptr.hbm [resolvable:$true] %s2690_s30 }
  0x1d   : > { %s2692_s5 = scalar_lea.hbm %s2691_s30, 8  ;;  %p2694_p9 = pneg %p2906_p2 }
  0x1e   : > { %p2693_p8 = scmp.ne.s32.totalorder %s2691_s30, %s2692_s5  ;;  %p2698_p0 = scmp.lt.s32.totalorder %s2691_s30, %s3814_s2 }
  0x1f   : > { %p2699_p3 = scmp.lt.s32.totalorder %s2697_s18, %s2692_s5 }
  0x20   : > { %p2695_p10 = pnand %p2694_p9, %p2693_p8 }
  0x21   : > { %p2700_p5 = por %p2699_p3, %p2698_p0 }
  0x22   : > { %p2696_p11 = pneg %p2695_p10 }
  0x24   : > { %p2701_p6 = pnand %p2700_p5, %p2696_p11 }
  0x26   : > { %2704 = shalt.err (!%p2701_p6)
}
  0x27   : > { %2551 = dma.hbm_to_vmem [thread:$0]  (!%p2906_p2), %s167_s25, 128, %s169_s27, %s157_s29  }
  0x28   : > { %177 = sbr.rel (%p2850_p4) target bundleno = 593 (0x251), region = 32 }
  0x2d   : > { %2765 = dma.done.wait (%p81_p1), [#allocation3], 16384  }
  0x2e   : > { %2767 = vsyncadd (%p81_p1), [#allocation3], 4294950912 }
  0x2f   : > { %2769 = dma.done.wait (%p81_p1), [#allocation6], 256  }
  0x30   : > { %2771 = vsyncadd (%p81_p1), [#allocation6], 4294967040  ;;  %s189_s17 = sand.u32 1, %s2844_s19   ;;  %s2932_s22 = sand.u32 1, %s2786_s13  }
  0x31   : > { %s1881_s20 = sshll.u32 %s2932_s22, 3  ;;  %s190_s23 = scalar_lea.sflag [#allocation3], %s189_s17 }
  0x32   : > { %s2935_s24 = scalar_lea.vmem [#allocation7], %s1881_s20 }
  0x33   : > { %2773 = dma.done.wait (%p2885_p13), %s190_s23, 128  }
  0x34   : > { %2775 = vsyncadd (%p2885_p13), %s190_s23, 4294967168  ;;  %v2333_v0 = vld [vmem:[#allocation2 + $0x380] sm:$0xf]  ;;  %v2512_v2 = vld [vmem:[#allocation2 + $0x384] sm:$0xf]  ;;  %s1882_s9 = sshll.u32 %s2932_s22, 7 }
  0x35   : > { %v2520_v1 = vld [vmem:[#allocation2 + $0x3bc] sm:$0xf0]  ;;  %v2335_v4 = vld [vmem:[#allocation2 + $0x3c0] sm:$0xf0]  ;;  %v2341_v5 = vld [vmem:[#allocation2 + $0x388] sm:$0xf] }
  0x36   : > { %v2941_v3 = vor.u32 %v2520_v1, %v2333_v0  ;;  %v2521_v6 = vld [vmem:[#allocation2 + $0x3c4] sm:$0xf0]  ;;  %v2943_v7 = vor.u32 %v2512_v2, %v2335_v4  ;;  %v2513_v9 = vld [vmem:[#allocation2 + $0x38c] sm:$0xf]  ;;  %v2269_v11 = vld [vmem:[#allocation2 + $0x300] sm:$0xf] }
  0x37   : > { %v2945_v8 = vor.u32 %v2521_v6, %v2341_v5  ;;  %v2343_v10 = vld [vmem:[#allocation2 + $0x3c8] sm:$0xf0]  ;;  %v2504_v13 = vld [vmem:[#allocation2 + $0x33c] sm:$0xf0]  ;;  %v2496_v14 = vld [vmem:[#allocation2 + $0x304] sm:$0xf] }
  0x38   : > { %993 = vmatpush.bf16.msra.mxu0 %v2941_v3  ;;  %v2948_v12 = vor.u32 %v2513_v9, %v2343_v10  ;;  %v2271_v15 = vld [vmem:[#allocation2 + $0x340] sm:$0xf0]  ;;  %1006 = vmatpush.bf16.msra.mxu1 %v2943_v7  ;;  %v2952_v16 = vor.u32 %v2504_v13, %v2269_v11  ;;  %v2277_v18 = vld [vmem:[#allocation2 + $0x308] sm:$0xf]  ;;  %v2497_v20 = vld [vmem:[#allocation2 + $0x30c] sm:$0xf] }
  0x39   : > { %1019 = vmatpush.bf16.msra.mxu2 %v2945_v8  ;;  %v2954_v17 = vor.u32 %v2496_v14, %v2271_v15  ;;  %v2505_v19 = vld [vmem:[#allocation2 + $0x344] sm:$0xf0]  ;;  %v2279_v22 = vld [vmem:[#allocation2 + $0x348] sm:$0xf0]  ;;  %v2205_v23 = vld [vmem:[#allocation2 + $0x280] sm:$0xf] }
  0x3a   : > { %1032 = vmatpush.bf16.msra.mxu3 %v2948_v12  ;;  %v2957_v21 = vor.u32 %v2505_v19, %v2277_v18  ;;  %v2488_v24 = vld [vmem:[#allocation2 + $0x2bc] sm:$0xf0]  ;;  %v2959_v25 = vor.u32 %v2497_v20, %v2279_v22  ;;  %v2480_v26 = vld [vmem:[#allocation2 + $0x284] sm:$0xf]  ;;  %v2213_v28 = vld [vmem:[#allocation2 + $0x288] sm:$0xf] }
  0x3b   : > { %v2207_v27 = vld [vmem:[#allocation2 + $0x2c0] sm:$0xf0]  ;;  %v2962_v29 = vor.u32 %v2488_v24, %v2205_v23  ;;  %v2489_v30 = vld [vmem:[#allocation2 + $0x2c4] sm:$0xf0]  ;;  %v2481_v31 = vld [vmem:[#allocation2 + $0x28c] sm:$0xf] }
  0x3c   : > { %994 = vmatpush.bf16.msra.mxu0 %v2952_v16  ;;  %v2215_v32 = vld [vmem:[#allocation2 + $0x2c8] sm:$0xf0]  ;;  %1007 = vmatpush.bf16.msra.mxu1 %v2954_v17  ;;  %v2966_v33 = vor.u32 %v2480_v26, %v2207_v27  ;;  %v2968_v34 = vor.u32 %v2489_v30, %v2213_v28  ;;  %v2141_v35 = vld [vmem:[#allocation2 + $0x200] sm:$0xf]  ;;  %v2464_v37 = vld [vmem:[#allocation2 + $0x204] sm:$0xf] }
  0x3d   : > { %1020 = vmatpush.bf16.msra.mxu2 %v2957_v21  ;;  %v2472_v36 = vld [vmem:[#allocation2 + $0x23c] sm:$0xf0]  ;;  %v2971_v38 = vor.u32 %v2481_v31, %v2215_v32  ;;  %v2143_v39 = vld [vmem:[#allocation2 + $0x240] sm:$0xf0]  ;;  %v2149_v40 = vld [vmem:[#allocation2 + $0x208] sm:$0xf] }
  0x3e   : > { %1033 = vmatpush.bf16.msra.mxu3 %v2959_v25  ;;  %v2473_v41 = vld [vmem:[#allocation2 + $0x244] sm:$0xf0]  ;;  %v2465_v42 = vld [vmem:[#allocation2 + $0x20c] sm:$0xf]  ;;  %v2974_v44 = vor.u32 %v2472_v36, %v2141_v35  ;;  %v2978_v45 = vor.u32 %v2464_v37, %v2143_v39  ;;  %v2077_v47 = vld [vmem:[#allocation2 + $0x180] sm:$0xf] }
  0x3f   : > { %v2151_v43 = vld [vmem:[#allocation2 + $0x248] sm:$0xf0]  ;;  %v2980_v46 = vor.u32 %v2473_v41, %v2149_v40  ;;  %v2456_v48 = vld [vmem:[#allocation2 + $0x1bc] sm:$0xf0]  ;;  %v2448_v49 = vld [vmem:[#allocation2 + $0x184] sm:$0xf] }
  0x40   : > { %995 = vmatpush.bf16.msra.mxu0 %v2962_v29  ;;  %1008 = vmatpush.bf16.msra.mxu1 %v2966_v33  ;;  %v2983_v50 = vor.u32 %v2465_v42, %v2151_v43  ;;  %v2079_v51 = vld [vmem:[#allocation2 + $0x1c0] sm:$0xf0]  ;;  %v2085_v52 = vld [vmem:[#allocation2 + $0x188] sm:$0xf]  ;;  %v2449_v54 = vld [vmem:[#allocation2 + $0x18c] sm:$0xf]  ;;  %v2986_v56 = vor.u32 %v2456_v48, %v2077_v47 }
  0x41   : > { %1021 = vmatpush.bf16.msra.mxu2 %v2968_v34  ;;  %v2457_v53 = vld [vmem:[#allocation2 + $0x1c4] sm:$0xf0]  ;;  %v2087_v55 = vld [vmem:[#allocation2 + $0x1c8] sm:$0xf0]  ;;  %v2990_v57 = vor.u32 %v2448_v49, %v2079_v51  ;;  %v2013_v59 = vld [vmem:[#allocation2 + $0x100] sm:$0xf] }
  0x42   : > { %1034 = vmatpush.bf16.msra.mxu3 %v2971_v38  ;;  %v2992_v58 = vor.u32 %v2457_v53, %v2085_v52  ;;  %v2440_v60 = vld [vmem:[#allocation2 + $0x13c] sm:$0xf0]  ;;  %v2432_v61 = vld [vmem:[#allocation2 + $0x104] sm:$0xf]  ;;  %v2995_v62 = vor.u32 %v2449_v54, %v2087_v55  ;;  %v2021_v0 = vld [vmem:[#allocation2 + $0x108] sm:$0xf] }
  0x43   : > { %v2015_v63 = vld [vmem:[#allocation2 + $0x140] sm:$0xf0]  ;;  %v2441_v1 = vld [vmem:[#allocation2 + $0x144] sm:$0xf0]  ;;  %v2433_v2 = vld [vmem:[#allocation2 + $0x10c] sm:$0xf]  ;;  %v2998_v5 = vor.u32 %v2440_v60, %v2013_v59 }
  0x44   : > { %996 = vmatpush.bf16.msra.mxu0 %v2974_v44  ;;  %1009 = vmatpush.bf16.msra.mxu1 %v2978_v45  ;;  %v2023_v4 = vld [vmem:[#allocation2 + $0x148] sm:$0xf0]  ;;  %v3002_v6 = vor.u32 %v2432_v61, %v2015_v63  ;;  %v3004_v9 = vor.u32 %v2441_v1, %v2021_v0  ;;  %v1949_v10 = vld [vmem:[#allocation2 + $0x80] sm:$0xf]  ;;  %v2416_v13 = vld [vmem:[#allocation2 + $0x84] sm:$0xf] }
  0x45   : > { %1022 = vmatpush.bf16.msra.mxu2 %v2980_v46  ;;  %v2424_v11 = vld [vmem:[#allocation2 + $0xbc] sm:$0xf0]  ;;  %v3007_v14 = vor.u32 %v2433_v2, %v2023_v4  ;;  %v1951_v15 = vld [vmem:[#allocation2 + $0xc0] sm:$0xf0]  ;;  %v1957_v18 = vld [vmem:[#allocation2 + $0x88] sm:$0xf] }
  0x46   : > { %1035 = vmatpush.bf16.msra.mxu3 %v2983_v50  ;;  %v2425_v19 = vld [vmem:[#allocation2 + $0xc4] sm:$0xf0]  ;;  %v2417_v20 = vld [vmem:[#allocation2 + $0x8c] sm:$0xf]  ;;  %v3010_v23 = vor.u32 %v2424_v11, %v1949_v10  ;;  %v1885_v24 = vld [vmem:[#allocation2] sm:$0xf]  ;;  %v3014_v27 = vor.u32 %v2416_v13, %v1951_v15 }
  0x47   : > { %v1959_v22 = vld [vmem:[#allocation2 + $0xc8] sm:$0xf0]  ;;  %v2408_v26 = vld [vmem:[#allocation2 + $0x3c] sm:$0xf0]  ;;  %v3016_v28 = vor.u32 %v2425_v19, %v1957_v18  ;;  %v2400_v30 = vld [vmem:[#allocation2 + $0x4] sm:$0xf] }
  0x48   : > { %997 = vmatpush.bf16.msra.mxu0 %v2986_v56  ;;  %1010 = vmatpush.bf16.msra.mxu1 %v2990_v57  ;;  %v1887_v31 = vld [vmem:[#allocation2 + $0x40] sm:$0xf0]  ;;  %v1893_v32 = vld [vmem:[#allocation2 + $0x8] sm:$0xf]  ;;  %v3019_v35 = vor.u32 %v2417_v20, %v1959_v22  ;;  %v2401_v37 = vld [vmem:[#allocation2 + $0xc] sm:$0xf]  ;;  %v3022_v43 = vor.u32 %v2408_v26, %v1885_v24 }
  0x49   : > { %1023 = vmatpush.bf16.msra.mxu2 %v2992_v58  ;;  %v2409_v36 = vld [vmem:[#allocation2 + $0x44] sm:$0xf0]  ;;  %v1895_v39 = vld [vmem:[#allocation2 + $0x48] sm:$0xf0]  ;;  %v2349_v40 = vld [vmem:[#allocation2 + $0x390] sm:$0xf]  ;;  %v3026_v51 = vor.u32 %v2400_v30, %v1887_v31 }
  0x4a   : > { %1036 = vmatpush.bf16.msra.mxu3 %v2995_v62  ;;  %v2522_v41 = vld [vmem:[#allocation2 + $0x3cc] sm:$0xf0]  ;;  %v2514_v42 = vld [vmem:[#allocation2 + $0x394] sm:$0xf]  ;;  %v2357_v48 = vld [vmem:[#allocation2 + $0x398] sm:$0xf]  ;;  %v3028_v52 = vor.u32 %v2409_v36, %v1893_v32  ;;  %v3031_v55 = vor.u32 %v2401_v37, %v1895_v39 }
  0x4b   : > { %v2351_v47 = vld [vmem:[#allocation2 + $0x3d0] sm:$0xf0]  ;;  %v2523_v49 = vld [vmem:[#allocation2 + $0x3d4] sm:$0xf0]  ;;  %v2515_v53 = vld [vmem:[#allocation2 + $0x39c] sm:$0xf]  ;;  %v3033_v59 = vor.u32 %v2522_v41, %v2349_v40 }
  0x4c   : > { %998 = vmatpush.bf16.msra.mxu0 %v2998_v5  ;;  %1011 = vmatpush.bf16.msra.mxu1 %v3002_v6  ;;  %v2359_v54 = vld [vmem:[#allocation2 + $0x3d8] sm:$0xf0]  ;;  %v3035_v60 = vor.u32 %v2514_v42, %v2351_v47  ;;  %v3037_v61 = vor.u32 %v2523_v49, %v2357_v48  ;;  %v2285_v63 = vld [vmem:[#allocation2 + $0x310] sm:$0xf]  ;;  %v2498_v1 = vld [vmem:[#allocation2 + $0x314] sm:$0xf] }
  0x4d   : > { %1024 = vmatpush.bf16.msra.mxu2 %v3004_v9  ;;  %v2506_v0 = vld [vmem:[#allocation2 + $0x34c] sm:$0xf0]  ;;  %v3040_v2 = vor.u32 %v2515_v53, %v2359_v54  ;;  %v2287_v4 = vld [vmem:[#allocation2 + $0x350] sm:$0xf0]  ;;  %v2293_v10 = vld [vmem:[#allocation2 + $0x318] sm:$0xf] }
  0x4e   : > { %1037 = vmatpush.bf16.msra.mxu3 %v3007_v14  ;;  %3984 = vst [vmem:[#allocation13_spill] sm:$0xff] %v3037_v61  ;;  %v2507_v11 = vld [vmem:[#allocation2 + $0x354] sm:$0xf0]  ;;  %v2499_v13 = vld [vmem:[#allocation2 + $0x31c] sm:$0xf]  ;;  %v3046_v18 = vor.u32 %v2506_v0, %v2285_v63  ;;  %v3050_v19 = vor.u32 %v2498_v1, %v2287_v4  ;;  %s3722_s25 = scalar_lea.vmem [#allocation8], %s1882_s9 }
  0x4f   : > { %3985 = vst [vmem:[#allocation14_spill] sm:$0xff] %v3040_v2  ;;  %v2295_v15 = vld [vmem:[#allocation2 + $0x358] sm:$0xf0]  ;;  %v3052_v20 = vor.u32 %v2507_v11, %v2293_v10  ;;  %v2221_v22 = vld [vmem:[#allocation2 + $0x290] sm:$0xf]  ;;  %s2528_s26 = sshll.u32 %s2844_s19, 7 }
  0x50   : > { %999 = vmatpush.bf16.msra.mxu0 %v3010_v23  ;;  %1012 = vmatpush.bf16.msra.mxu1 %v3014_v27  ;;  %3986 = vst [vmem:[#allocation15_spill] sm:$0xff] %v3046_v18  ;;  %v2490_v24 = vld [vmem:[#allocation2 + $0x2cc] sm:$0xf0]  ;;  %v2482_v26 = vld [vmem:[#allocation2 + $0x294] sm:$0xf]  ;;  %v3055_v30 = vor.u32 %v2499_v13, %v2295_v15  ;;  %s1777_s29 = scalar_lea.hbm %s3815_s3, %s2528_s26  ;;  %s1779_s30 = sshll.u32 %s3722_s25, 4  ;;  %s1780_s30 = int_to_ptr.vmem [resolvable:$true] %s1779_s30 }
  0x51   : > { %1025 = vmatpush.bf16.msra.mxu2 %v3016_v28  ;;  %3987 = vst [vmem:[#allocation16_spill] sm:$0xff] %v3050_v19  ;;  %v2223_v31 = vld [vmem:[#allocation2 + $0x2d0] sm:$0xf0]  ;;  %v2229_v32 = vld [vmem:[#allocation2 + $0x298] sm:$0xf]  ;;  %v3058_v40 = vor.u32 %v2490_v24, %v2221_v22  ;;  %s1781_s5 = sshll.u32 %s1777_s29, 4  ;;  %s1782_s5 = int_to_ptr.hbm [resolvable:$true] %s1781_s5 }
  0x52   : > { %1038 = vmatpush.bf16.msra.mxu3 %v3019_v35  ;;  %3988 = vst [vmem:[#allocation17_spill] sm:$0xff] %v3052_v20  ;;  %v2491_v36 = vld [vmem:[#allocation2 + $0x2d4] sm:$0xf0]  ;;  %v2483_v37 = vld [vmem:[#allocation2 + $0x29c] sm:$0xf]  ;;  %v3063_v42 = vor.u32 %v2482_v26, %v2223_v31  ;;  %s1766_s19 = scalar_lea.sflag [#allocation4], %s2932_s22 }
  0x53   : > { %3989 = vst [vmem:[#allocation18_spill] sm:$0xff] %v3055_v30  ;;  %v2231_v39 = vld [vmem:[#allocation2 + $0x2d8] sm:$0xf0]  ;;  %v3065_v47 = vor.u32 %v2491_v36, %v2229_v32  ;;  %v2157_v48 = vld [vmem:[#allocation2 + $0x210] sm:$0xf]  ;;  %s2734_s6 = sshra.s32 %s1782_s5, 4  ;;  %s2735_s6 = int_to_ptr.hbm [resolvable:$true] %s2734_s6 }
  0x54   : > { %1000 = vmatpush.bf16.msra.mxu0 %v3022_v43  ;;  %1013 = vmatpush.bf16.msra.mxu1 %v3026_v51  ;;  %3990 = vst [vmem:[#allocation19_spill] sm:$0xff] %v3058_v40  ;;  %v217_v41 = vld [vmem:[%s2935_s24] sm:$0xff]  ;;  %v3070_v63 = vor.u32 %v2483_v37, %v2231_v39  ;;  %s2736_s11 = scalar_lea.hbm %s2735_s6, 128  ;;  %s2740_s10 = scalar_lea.hbm %s3815_s3, 256 }
  0x55   : > { %1026 = vmatpush.bf16.msra.mxu2 %v3028_v52  ;;  %3991 = vst [vmem:[#allocation20_spill] sm:$0xff] %v3063_v42  ;;  %v2474_v49 = vld [vmem:[#allocation2 + $0x24c] sm:$0xf0]  ;;  %v2466_v53 = vld [vmem:[#allocation2 + $0x214] sm:$0xf]  ;;  %v3067_v54 = vpack.c.bf16 %v217_v41, %v217_v41  ;;  %p2737_p1 = scmp.ne.s32.totalorder %s2735_s6, %s2736_s11  ;;  %p2741_p13 = scmp.lt.s32.totalorder %s2735_s6, %s3815_s3 }
  0x56   : > { %1039 = vmatpush.bf16.msra.mxu3 %v3031_v55  ;;  %3992 = vst [vmem:[#allocation21_spill] sm:$0xff] %v3065_v47  ;;  %v2159_v0 = vld [vmem:[#allocation2 + $0x250] sm:$0xf0]  ;;  %v2165_v1 = vld [vmem:[#allocation2 + $0x218] sm:$0xf]  ;;  %v3074_v15 = vor.u32 %v2474_v49, %v2157_v48  ;;  %p2742_p2 = scmp.lt.s32.totalorder %s2740_s10, %s2736_s11 }
  0x57   : > { %3993 = vst [vmem:[#allocation22_spill] sm:$0xff] %v3070_v63  ;;  %v2475_v4 = vld [vmem:[#allocation2 + $0x254] sm:$0xf0]  ;;  %v2467_v10 = vld [vmem:[#allocation2 + $0x21c] sm:$0xf]  ;;  %v347_v13 = vunpack.c.l.bf16 %v3067_v54  ;;  %v3078_v22 = vor.u32 %v2466_v53, %v2159_v0  ;;  %p2738_p4 = pnand %p2737_p1, %p2876_p12 }
  0x58   : > { %1045 = vmatpush.bf16.msrb.mxu0 %v3033_v59  ;;  %1058 = vmatpush.bf16.msrb.mxu1 %v3035_v60  ;;  %v2167_v11 = vld [vmem:[#allocation2 + $0x258] sm:$0xf0]  ;;  %3994 = vst [vmem:[#allocation23_spill] sm:$0xff] %v3074_v15  ;;  %v3080_v24 = vor.u32 %v2475_v4, %v2165_v1  ;;  %v2093_v26 = vld [vmem:[#allocation2 + $0x190] sm:$0xf]  ;;  %p2743_p8 = por %p2742_p2, %p2741_p13 }
  0x59   : > { %1071 = vmatpush.bf16.msrb.mxu2 %v3037_v61  ;;  %3995 = vst [vmem:[#allocation24_spill] sm:$0xff] %v3078_v22  ;;  %v2458_v31 = vld [vmem:[#allocation2 + $0x1cc] sm:$0xf0]  ;;  %v2450_v32 = vld [vmem:[#allocation2 + $0x194] sm:$0xf]  ;;  %v3082_v36 = vsub.f32 %v217_v41, %v347_v13  ;;  %v3085_v37 = vor.u32 %v2467_v10, %v2167_v11  ;;  %p2739_p6 = pneg %p2738_p4 }
  0x5a   : > { %1084 = vmatpush.bf16.msrb.mxu3 %v3040_v2  ;;  %3996 = vst [vmem:[#allocation25_spill] sm:$0xff] %v3080_v24  ;;  %v2095_v39 = vld [vmem:[#allocation2 + $0x1d0] sm:$0xf0]  ;;  %v2101_v48 = vld [vmem:[#allocation2 + $0x198] sm:$0xf]  ;;  %v3092_v0 = vor.u32 %v2458_v31, %v2093_v26 }
  0x5b   : > { %3997 = vst [vmem:[#allocation26_spill] sm:$0xff] %v3082_v36  ;;  %v2459_v49 = vld [vmem:[#allocation2 + $0x1d4] sm:$0xf0]  ;;  %v3089_v53 = vpack.c.bf16 %v3082_v36, %v3082_v36  ;;  %v3096_v41 = vor.u32 %v2450_v32, %v2095_v39  ;;  %v2029_v4 = vld [vmem:[#allocation2 + $0x110] sm:$0xf]  ;;  %p2744_p9 = pnand %p2743_p8, %p2739_p6 }
  0x5c   : > { %1046 = vmatpush.bf16.msrb.mxu0 %v3046_v18  ;;  %1059 = vmatpush.bf16.msrb.mxu1 %v3050_v19  ;;  %3998 = vst [vmem:[#allocation27_spill] sm:$0xff] %v3085_v37  ;;  %v3098_v1 = vor.u32 %v2459_v49, %v2101_v48  ;;  %v2442_v10 = vld [vmem:[#allocation2 + $0x14c] sm:$0xf0]  ;;  %v2434_v11 = vld [vmem:[#allocation2 + $0x114] sm:$0xf] }
  0x5d   : > { %1072 = vmatpush.bf16.msrb.mxu2 %v3052_v20  ;;  %3999 = vst [vmem:[#allocation28_spill] sm:$0xff] %v3092_v0  ;;  %v2031_v36 = vld [vmem:[#allocation2 + $0x150] sm:$0xf0]  ;;  %v2435_v26 = vld [vmem:[#allocation2 + $0x11c] sm:$0xf]  ;;  %1040 = vmatmul.bf16.vlgmr.msra.gmra.mxu3 %v3089_v53  ;;  %v3107_v32 = vor.u32 %v2442_v10, %v2029_v4 }
  0x5e   : > { %1085 = vmatpush.bf16.msrb.mxu3 %v3055_v30  ;;  %4000 = vst [vmem:[#allocation29_spill] sm:$0xff] %v3096_v41  ;;  %1027 = vmatmul.bf16.vlgmr.msra.gmra.mxu2 %v3089_v53  ;;  %v2039_v31 = vld [vmem:[#allocation2 + $0x158] sm:$0xf0]  ;;  %v1965_v39 = vld [vmem:[#allocation2 + $0x90] sm:$0xf] }
  0x5f   : > { %4001 = vst [vmem:[#allocation30_spill] sm:$0xff] %v3098_v1  ;;  %1001 = vmatmul.bf16.vlgmr.msra.gmra.mxu0 %v3089_v53  ;;  %1014 = vmatmul.bf16.vlgmr.msra.gmra.mxu1 %v3089_v53  ;;  %v2426_v48 = vld [vmem:[#allocation2 + $0xcc] sm:$0xf0]  ;;  %v2418_v49 = vld [vmem:[#allocation2 + $0x94] sm:$0xf] }
  0x60   : > { %1047 = vmatpush.bf16.msrb.mxu0 %v3058_v40  ;;  %1060 = vmatpush.bf16.msrb.mxu1 %v3063_v42  ;;  %v2451_v40 = vld [vmem:[#allocation2 + $0x19c] sm:$0xf]  ;;  %4003 = vst [vmem:[#allocation32_spill] sm:$0xff] %v3107_v32  ;;  %v1973_v4 = vld [vmem:[#allocation2 + $0x98] sm:$0xf] }
  0x61   : > { %1073 = vmatpush.bf16.msrb.mxu2 %v3065_v47  ;;  %v2103_v42 = vld [vmem:[#allocation2 + $0x1d8] sm:$0xf0]  ;;  %v2427_v10 = vld [vmem:[#allocation2 + $0xd4] sm:$0xf0]  ;;  %v2365_v47 = vld [vmem:[#allocation2 + $0x3a0] sm:$0xf] }
  0x62   : > { %1086 = vmatpush.bf16.msrb.mxu3 %v3070_v63  ;;  %v3101_v13 = vor.u32 %v2451_v40, %v2103_v42  ;;  %v2037_v63 = vld [vmem:[#allocation2 + $0x118] sm:$0xf]  ;;  %v3112_v40 = vor.u32 %v2434_v11, %v2031_v36  ;;  %v1901_v36 = vld [vmem:[#allocation2 + $0x10] sm:$0xf]  ;;  %v2524_v30 = vld [vmem:[#allocation2 + $0x3dc] sm:$0xf0] }
  0x63   : > { %v2410_v11 = vld [vmem:[#allocation2 + $0x4c] sm:$0xf0]  ;;  %v2516_v20 = vld [vmem:[#allocation2 + $0x3a4] sm:$0xf]  ;;  %v2301_v19 = vld [vmem:[#allocation2 + $0x320] sm:$0xf] }
  0x64   : > { %1048 = vmatpush.bf16.msrb.mxu0 %v3074_v15  ;;  %1061 = vmatpush.bf16.msrb.mxu1 %v3078_v22  ;;  %4002 = vst [vmem:[#allocation31_spill] sm:$0xff] %v3101_v13  ;;  %v2443_v15 = vld [vmem:[#allocation2 + $0x154] sm:$0xf0]  ;;  %v1975_v22 = vld [vmem:[#allocation2 + $0xd8] sm:$0xf0] }
  0x65   : > { %1074 = vmatpush.bf16.msrb.mxu2 %v3080_v24  ;;  %4004 = vst [vmem:[#allocation33_spill] sm:$0xff] %v3112_v40  ;;  %v3114_v42 = vor.u32 %v2443_v15, %v2037_v63  ;;  %v2419_v24 = vld [vmem:[#allocation2 + $0x9c] sm:$0xf]  ;;  %v3126_v15 = vor.u32 %v2427_v10, %v1973_v4  ;;  %v2525_v4 = vld [vmem:[#allocation2 + $0x3e4] sm:$0xf0] }
  0x66   : > { %1087 = vmatpush.bf16.msrb.mxu3 %v3085_v37  ;;  %v3117_v37 = vor.u32 %v2435_v26, %v2039_v31  ;;  %v2402_v26 = vld [vmem:[#allocation2 + $0x14] sm:$0xf]  ;;  %v2500_v18 = vld [vmem:[#allocation2 + $0x324] sm:$0xf] }
  0x67   : > { %4005 = vst [vmem:[#allocation34_spill] sm:$0xff] %v3114_v42  ;;  %v1903_v31 = vld [vmem:[#allocation2 + $0x50] sm:$0xf0] }
  0x68   : > { %1049 = vmatpush.bf16.msrb.mxu0 %v3092_v0  ;;  %1062 = vmatpush.bf16.msrb.mxu1 %v3096_v41  ;;  %4006 = vst [vmem:[#allocation35_spill] sm:$0xff] %v3117_v37  ;;  %v1967_v0 = vld [vmem:[#allocation2 + $0xd0] sm:$0xf0]  ;;  %v3120_v41 = vor.u32 %v2426_v48, %v1965_v39  ;;  %v2403_v39 = vld [vmem:[#allocation2 + $0x1c] sm:$0xf]  ;;  %v3136_v10 = vor.u32 %v2402_v26, %v1903_v31 }
  0x69   : > { %1075 = vmatpush.bf16.msrb.mxu2 %v3098_v1  ;;  %v3124_v63 = vor.u32 %v2418_v49, %v1967_v0  ;;  %4009 = vst [vmem:[#allocation38_spill] sm:$0xff] %v3126_v15  ;;  %v3129_v1 = vor.u32 %v2419_v24, %v1975_v22  ;;  %v1911_v48 = vld [vmem:[#allocation2 + $0x58] sm:$0xf0]  ;;  %v2367_v0 = vld [vmem:[#allocation2 + $0x3e0] sm:$0xf0] }
  0x6a   : > { %1088 = vmatpush.bf16.msrb.mxu3 %v3101_v13  ;;  %4007 = vst [vmem:[#allocation36_spill] sm:$0xff] %v3120_v41  ;;  %v1909_v13 = vld [vmem:[#allocation2 + $0x18] sm:$0xf]  ;;  %v2373_v49 = vld [vmem:[#allocation2 + $0x3a8] sm:$0xf] }
  0x6b   : > { %4008 = vst [vmem:[#allocation37_spill] sm:$0xff] %v3124_v63  ;;  %v2517_v24 = vld [vmem:[#allocation2 + $0x3ac] sm:$0xf]  ;;  %v2509_v31 = vld [vmem:[#allocation2 + $0x364] sm:$0xf0] }
  0x6c   : > { %1050 = vmatpush.bf16.msrb.mxu0 %v3107_v32  ;;  %1063 = vmatpush.bf16.msrb.mxu1 %v3112_v40  ;;  %4010 = vst [vmem:[#allocation39_spill] sm:$0xff] %v3129_v1  ;;  %v2411_v32 = vld [vmem:[#allocation2 + $0x54] sm:$0xf0]  ;;  %v3141_v40 = vor.u32 %v2403_v39, %v1911_v48  ;;  %v2237_v48 = vld [vmem:[#allocation2 + $0x2a0] sm:$0xf] }
  0x6d   : > { %1076 = vmatpush.bf16.msrb.mxu2 %v3114_v42  ;;  %v3132_v42 = vor.u32 %v2410_v11, %v1901_v36  ;;  %4012 = vst [vmem:[#allocation41_spill] sm:$0xff] %v3136_v10  ;;  %v3138_v22 = vor.u32 %v2411_v32, %v1909_v13  ;;  %v3145_v36 = vor.u32 %v2516_v20, %v2367_v0  ;;  %v2303_v13 = vld [vmem:[#allocation2 + $0x360] sm:$0xf0]  ;;  %v2309_v32 = vld [vmem:[#allocation2 + $0x328] sm:$0xf] }
  0x6e   : > { %1089 = vmatpush.bf16.msrb.mxu3 %v3117_v37  ;;  %v2375_v37 = vld [vmem:[#allocation2 + $0x3e8] sm:$0xf0]  ;;  %4014 = vst [vmem:[#allocation43_spill] sm:$0xff] %v3141_v40  ;;  %v3147_v11 = vor.u32 %v2525_v4, %v2373_v49  ;;  %v3162_v39 = vor.u32 %v2509_v31, %v2309_v32  ;;  %v2492_v0 = vld [vmem:[#allocation2 + $0x2dc] sm:$0xf0] }
  0x6f   : > { %4011 = vst [vmem:[#allocation40_spill] sm:$0xff] %v3132_v42  ;;  %v3150_v26 = vor.u32 %v2517_v24, %v2375_v37  ;;  %v3160_v37 = vor.u32 %v2500_v18, %v2303_v13  ;;  %v2484_v49 = vld [vmem:[#allocation2 + $0x2a4] sm:$0xf]  ;;  %v3171_v18 = vor.u32 %v2492_v0, %v2237_v48  ;;  %v2173_v31 = vld [vmem:[#allocation2 + $0x220] sm:$0xf] }
  0x70   : > { %1051 = vmatpush.bf16.msrb.mxu0 %v3120_v41  ;;  %1064 = vmatpush.bf16.msrb.mxu1 %v3124_v63  ;;  %4013 = vst [vmem:[#allocation42_spill] sm:$0xff] %v3138_v22  ;;  %v3143_v41 = vor.u32 %v2524_v30, %v2365_v47  ;;  %v2508_v63 = vld [vmem:[#allocation2 + $0x35c] sm:$0xf0]  ;;  %v2501_v30 = vld [vmem:[#allocation2 + $0x32c] sm:$0xf] }
  0x71   : > { %1077 = vmatpush.bf16.msrb.mxu2 %v3126_v15  ;;  %4016 = vst [vmem:[#allocation45_spill] sm:$0xff] %v3145_v36  ;;  %v2311_v47 = vld [vmem:[#allocation2 + $0x368] sm:$0xf0]  ;;  %v3156_v20 = vor.u32 %v2508_v63, %v2301_v19  ;;  %v2239_v24 = vld [vmem:[#allocation2 + $0x2e0] sm:$0xf0] }
  0x72   : > { %1090 = vmatpush.bf16.msrb.mxu3 %v3129_v1  ;;  %4015 = vst [vmem:[#allocation44_spill] sm:$0xff] %v3143_v41  ;;  %v3165_v4 = vor.u32 %v2501_v30, %v2311_v47  ;;  %v2485_v19 = vld [vmem:[#allocation2 + $0x2ac] sm:$0xf]  ;;  %v3176_v13 = vor.u32 %v2484_v49, %v2239_v24  ;;  %v2476_v30 = vld [vmem:[#allocation2 + $0x25c] sm:$0xf0] }
  0x73   : > { %4017 = vst [vmem:[#allocation46_spill] sm:$0xff] %v3147_v11  ;;  %v2247_v63 = vld [vmem:[#allocation2 + $0x2e8] sm:$0xf0]  ;;  %v2468_v47 = vld [vmem:[#allocation2 + $0x224] sm:$0xf] }
  0x74   : > { %1052 = vmatpush.bf16.msrb.mxu0 %v3132_v42  ;;  %4018 = vst [vmem:[#allocation47_spill] sm:$0xff] %v3150_v26  ;;  %1065 = vmatpush.bf16.msrb.mxu1 %v3136_v10  ;;  %v2181_v48 = vld [vmem:[#allocation2 + $0x228] sm:$0xf]  ;;  %v2109_v49 = vld [vmem:[#allocation2 + $0x1a0] sm:$0xf] }
  0x75   : > { %1078 = vmatpush.bf16.msrb.mxu2 %v3138_v22  ;;  %4019 = vst [vmem:[#allocation48_spill] sm:$0xff] %v3156_v20  ;;  %v2477_v0 = vld [vmem:[#allocation2 + $0x264] sm:$0xf0]  ;;  %v2460_v24 = vld [vmem:[#allocation2 + $0x1dc] sm:$0xf0] }
  0x76   : > { %1091 = vmatpush.bf16.msrb.mxu3 %v3141_v40  ;;  %4020 = vst [vmem:[#allocation49_spill] sm:$0xff] %v3160_v37  ;;  %v2245_v40 = vld [vmem:[#allocation2 + $0x2a8] sm:$0xf]  ;;  %v2381_v22 = vld [vmem:[#allocation2 + $0x3b0] sm:$0xf] }
  0x77   : > { %4021 = vst [vmem:[#allocation50_spill] sm:$0xff] %v3162_v39  ;;  %1053 = vmatmul.bf16.vlgmr.msrb.gmra.mxu0 %v3089_v53  ;;  %1066 = vmatmul.bf16.vlgmr.msrb.gmra.mxu1 %v3089_v53  ;;  %v2526_v10 = vld [vmem:[#allocation2 + $0x3ec] sm:$0xf0]  ;;  %v2518_v42 = vld [vmem:[#allocation2 + $0x3b4] sm:$0xf] }
  0x78   : > { %1097 = vmatpush.bf16.msra.mxu0 %v3143_v41  ;;  %1110 = vmatpush.bf16.msra.mxu1 %v3145_v36  ;;  %4022 = vst [vmem:[#allocation51_spill] sm:$0xff] %v3165_v4  ;;  %v2493_v41 = vld [vmem:[#allocation2 + $0x2e4] sm:$0xf0]  ;;  %v2183_v36 = vld [vmem:[#allocation2 + $0x268] sm:$0xf0] }
  0x79   : > { %1123 = vmatpush.bf16.msra.mxu2 %v3147_v11  ;;  %1092 = vmatmul.bf16.vlgmr.msrb.gmra.mxu3 %v3089_v53  ;;  %4023 = vst [vmem:[#allocation52_spill] sm:$0xff] %v3171_v18  ;;  %v3178_v32 = vor.u32 %v2493_v41, %v2245_v40  ;;  %v2469_v11 = vld [vmem:[#allocation2 + $0x22c] sm:$0xf]  ;;  %v3190_v40 = vor.u32 %v2477_v0, %v2181_v48  ;;  %v2045_v48 = vld [vmem:[#allocation2 + $0x120] sm:$0xf] }
  0x7a   : > { %1136 = vmatpush.bf16.msra.mxu3 %v3150_v26  ;;  %1079 = vmatmul.bf16.vlgmr.msrb.gmra.mxu2 %v3089_v53  ;;  %4024 = vst [vmem:[#allocation53_spill] sm:$0xff] %v3176_v13  ;;  %v3181_v26 = vor.u32 %v2485_v19, %v2247_v63  ;;  %v2452_v19 = vld [vmem:[#allocation2 + $0x1a4] sm:$0xf]  ;;  %v3193_v63 = vor.u32 %v2469_v11, %v2183_v36  ;;  %v2444_v36 = vld [vmem:[#allocation2 + $0x15c] sm:$0xf0] }
  0x7b   : > { %4025 = vst [vmem:[#allocation54_spill] sm:$0xff] %v3178_v32  ;;  %v2436_v11 = vld [vmem:[#allocation2 + $0x124] sm:$0xf]  ;;  %v2317_v1 = vld [vmem:[#allocation2 + $0x330] sm:$0xf] }
  0x7c   : > { %1098 = vmatpush.bf16.msra.mxu0 %v3156_v20  ;;  %1111 = vmatpush.bf16.msra.mxu1 %v3160_v37  ;;  %4026 = vst [vmem:[#allocation55_spill] sm:$0xff] %v3181_v26  ;;  %v2175_v20 = vld [vmem:[#allocation2 + $0x260] sm:$0xf0]  ;;  %v3184_v37 = vor.u32 %v2476_v30, %v2173_v31  ;;  %v2453_v31 = vld [vmem:[#allocation2 + $0x1ac] sm:$0xf] }
  0x7d   : > { %1124 = vmatpush.bf16.msra.mxu2 %v3162_v39  ;;  %v3188_v41 = vor.u32 %v2468_v47, %v2175_v20  ;;  %4029 = vst [vmem:[#allocation58_spill] sm:$0xff] %v3190_v40  ;;  %v2117_v39 = vld [vmem:[#allocation2 + $0x1a8] sm:$0xf]  ;;  %v2119_v30 = vld [vmem:[#allocation2 + $0x1e8] sm:$0xf0] }
  0x7e   : > { %1137 = vmatpush.bf16.msra.mxu3 %v3165_v4  ;;  %4027 = vst [vmem:[#allocation56_spill] sm:$0xff] %v3184_v37  ;;  %v2111_v4 = vld [vmem:[#allocation2 + $0x1e0] sm:$0xf0]  ;;  %v3205_v0 = vor.u32 %v2453_v31, %v2119_v30  ;;  %v2502_v15 = vld [vmem:[#allocation2 + $0x334] sm:$0xf] }
  0x7f   : > { %4028 = vst [vmem:[#allocation57_spill] sm:$0xff] %v3188_v41  ;;  %v3200_v20 = vor.u32 %v2452_v19, %v2111_v4  ;;  %v2428_v19 = vld [vmem:[#allocation2 + $0xdc] sm:$0xf0]  ;;  %v2420_v31 = vld [vmem:[#allocation2 + $0xa4] sm:$0xf] }
  0x80   : > { %1099 = vmatpush.bf16.msra.mxu0 %v3171_v18  ;;  %1112 = vmatpush.bf16.msra.mxu1 %v3176_v13  ;;  %4030 = vst [vmem:[#allocation59_spill] sm:$0xff] %v3193_v63  ;;  %v2461_v18 = vld [vmem:[#allocation2 + $0x1e4] sm:$0xf0]  ;;  %v3196_v13 = vor.u32 %v2460_v24, %v2109_v49  ;;  %v2437_v49 = vld [vmem:[#allocation2 + $0x12c] sm:$0xf] }
  0x81   : > { %1125 = vmatpush.bf16.msra.mxu2 %v3178_v32  ;;  %4032 = vst [vmem:[#allocation61_spill] sm:$0xff] %v3200_v20  ;;  %v3202_v47 = vor.u32 %v2461_v18, %v2117_v39  ;;  %v2053_v32 = vld [vmem:[#allocation2 + $0x128] sm:$0xf]  ;;  %v2055_v24 = vld [vmem:[#allocation2 + $0x168] sm:$0xf0] }
  0x82   : > { %1138 = vmatpush.bf16.msra.mxu3 %v3181_v26  ;;  %4031 = vst [vmem:[#allocation60_spill] sm:$0xff] %v3196_v13  ;;  %v2047_v26 = vld [vmem:[#allocation2 + $0x160] sm:$0xf0]  ;;  %v1981_v18 = vld [vmem:[#allocation2 + $0xa0] sm:$0xf]  ;;  %v3217_v30 = vor.u32 %v2437_v49, %v2055_v24 }
  0x83   : > { %4033 = vst [vmem:[#allocation62_spill] sm:$0xff] %v3202_v47  ;;  %v3212_v39 = vor.u32 %v2436_v11, %v2047_v26  ;;  %v1917_v26 = vld [vmem:[#allocation2 + $0x20] sm:$0xf]  ;;  %v2404_v49 = vld [vmem:[#allocation2 + $0x24] sm:$0xf] }
  0x84   : > { %1100 = vmatpush.bf16.msra.mxu0 %v3184_v37  ;;  %1113 = vmatpush.bf16.msra.mxu1 %v3188_v41  ;;  %4034 = vst [vmem:[#allocation63_spill] sm:$0xff] %v3205_v0  ;;  %v2445_v37 = vld [vmem:[#allocation2 + $0x164] sm:$0xf0]  ;;  %v3208_v41 = vor.u32 %v2444_v36, %v2045_v48  ;;  %v2421_v48 = vld [vmem:[#allocation2 + $0xac] sm:$0xf] }
  0x85   : > { %1126 = vmatpush.bf16.msra.mxu2 %v3190_v40  ;;  %4036 = vst [vmem:[#allocation65_spill] sm:$0xff] %v3212_v39  ;;  %v3214_v4 = vor.u32 %v2445_v37, %v2053_v32  ;;  %v1989_v40 = vld [vmem:[#allocation2 + $0xa8] sm:$0xf]  ;;  %v1991_v36 = vld [vmem:[#allocation2 + $0xe8] sm:$0xf0] }
  0x86   : > { %1139 = vmatpush.bf16.msra.mxu3 %v3193_v63  ;;  %4035 = vst [vmem:[#allocation64_spill] sm:$0xff] %v3208_v41  ;;  %v1983_v63 = vld [vmem:[#allocation2 + $0xe0] sm:$0xf0]  ;;  %v2412_v11 = vld [vmem:[#allocation2 + $0x5c] sm:$0xf0] }
  0x87   : > { %4037 = vst [vmem:[#allocation66_spill] sm:$0xff] %v3214_v4  ;;  %v3224_v37 = vor.u32 %v2420_v31, %v1983_v63  ;;  %v1919_v24 = vld [vmem:[#allocation2 + $0x60] sm:$0xf0]  ;;  %v2383_v63 = vld [vmem:[#allocation2 + $0x3f0] sm:$0xf0] }
  0x88   : > { %1101 = vmatpush.bf16.msra.mxu0 %v3196_v13  ;;  %1114 = vmatpush.bf16.msra.mxu1 %v3200_v20  ;;  %4038 = vst [vmem:[#allocation67_spill] sm:$0xff] %v3217_v30  ;;  %v2429_v13 = vld [vmem:[#allocation2 + $0xe4] sm:$0xf0]  ;;  %v3220_v20 = vor.u32 %v2428_v19, %v1981_v18  ;;  %v2405_v18 = vld [vmem:[#allocation2 + $0x2c] sm:$0xf]  ;;  %v3236_v31 = vor.u32 %v2404_v49, %v1919_v24 }
  0x89   : > { %1127 = vmatpush.bf16.msra.mxu2 %v3202_v47  ;;  %4040 = vst [vmem:[#allocation69_spill] sm:$0xff] %v3224_v37  ;;  %v3226_v32 = vor.u32 %v2429_v13, %v1989_v40  ;;  %v3229_v47 = vor.u32 %v2421_v48, %v1991_v36  ;;  %v1927_v19 = vld [vmem:[#allocation2 + $0x68] sm:$0xf0]  ;;  %v2389_v13 = vld [vmem:[#allocation2 + $0x3b8] sm:$0xf] }
  0x8a   : > { %1140 = vmatpush.bf16.msra.mxu3 %v3205_v0  ;;  %4039 = vst [vmem:[#allocation68_spill] sm:$0xff] %v3220_v20  ;;  %v1925_v0 = vld [vmem:[#allocation2 + $0x28] sm:$0xf]  ;;  %v2527_v40 = vld [vmem:[#allocation2 + $0x3f4] sm:$0xf0] }
  0x8b   : > { %4041 = vst [vmem:[#allocation70_spill] sm:$0xff] %v3226_v32  ;;  %v2519_v36 = vld [vmem:[#allocation2 + $0x3bc] sm:$0xf]  ;;  %v2511_v24 = vld [vmem:[#allocation2 + $0x374] sm:$0xf0] }
  0x8c   : > { %1102 = vmatpush.bf16.msra.mxu0 %v3208_v41  ;;  %1115 = vmatpush.bf16.msra.mxu1 %v3212_v39  ;;  %4042 = vst [vmem:[#allocation71_spill] sm:$0xff] %v3229_v47  ;;  %v2413_v41 = vld [vmem:[#allocation2 + $0x64] sm:$0xf0]  ;;  %v3241_v39 = vor.u32 %v2405_v18, %v1927_v19  ;;  %v2253_v19 = vld [vmem:[#allocation2 + $0x2b0] sm:$0xf] }
  0x8d   : > { %1128 = vmatpush.bf16.msra.mxu2 %v3214_v4  ;;  %v3232_v4 = vor.u32 %v2412_v11, %v1917_v26  ;;  %4044 = vst [vmem:[#allocation73_spill] sm:$0xff] %v3236_v31  ;;  %v3238_v48 = vor.u32 %v2413_v41, %v1925_v0  ;;  %v3245_v26 = vor.u32 %v2518_v42, %v2383_v63  ;;  %v2319_v41 = vld [vmem:[#allocation2 + $0x370] sm:$0xf0]  ;;  %v2325_v0 = vld [vmem:[#allocation2 + $0x338] sm:$0xf] }
  0x8e   : > { %1141 = vmatpush.bf16.msra.mxu3 %v3217_v30  ;;  %v2391_v30 = vld [vmem:[#allocation2 + $0x3f8] sm:$0xf0]  ;;  %4046 = vst [vmem:[#allocation75_spill] sm:$0xff] %v3241_v39  ;;  %v3247_v11 = vor.u32 %v2527_v40, %v2389_v13  ;;  %v3262_v18 = vor.u32 %v2511_v24, %v2325_v0  ;;  %v2494_v63 = vld [vmem:[#allocation2 + $0x2ec] sm:$0xf0] }
  0x8f   : > { %4043 = vst [vmem:[#allocation72_spill] sm:$0xff] %v3232_v4  ;;  %v3250_v49 = vor.u32 %v2519_v36, %v2391_v30  ;;  %v3260_v30 = vor.u32 %v2502_v15, %v2319_v41  ;;  %v2486_v13 = vld [vmem:[#allocation2 + $0x2b4] sm:$0xf]  ;;  %v3271_v15 = vor.u32 %v2494_v63, %v2253_v19  ;;  %v2189_v24 = vld [vmem:[#allocation2 + $0x230] sm:$0xf] }
  0x90   : > { %1103 = vmatpush.bf16.msra.mxu0 %v3220_v20  ;;  %1116 = vmatpush.bf16.msra.mxu1 %v3224_v37  ;;  %4045 = vst [vmem:[#allocation74_spill] sm:$0xff] %v3238_v48  ;;  %v3243_v20 = vor.u32 %v2526_v10, %v2381_v22  ;;  %v2510_v37 = vld [vmem:[#allocation2 + $0x36c] sm:$0xf0]  ;;  %v2503_v10 = vld [vmem:[#allocation2 + $0x33c] sm:$0xf] }
  0x91   : > { %1129 = vmatpush.bf16.msra.mxu2 %v3226_v32  ;;  %4048 = vst [vmem:[#allocation77_spill] sm:$0xff] %v3245_v26  ;;  %v2327_v22 = vld [vmem:[#allocation2 + $0x378] sm:$0xf0]  ;;  %v3256_v42 = vor.u32 %v2510_v37, %v2317_v1  ;;  %v2255_v36 = vld [vmem:[#allocation2 + $0x2f0] sm:$0xf0] }
  0x92   : > { %1142 = vmatpush.bf16.msra.mxu3 %v3229_v47  ;;  %4047 = vst [vmem:[#allocation76_spill] sm:$0xff] %v3243_v20  ;;  %v3265_v40 = vor.u32 %v2503_v10, %v2327_v22  ;;  %v2487_v1 = vld [vmem:[#allocation2 + $0x2bc] sm:$0xf]  ;;  %v3276_v41 = vor.u32 %v2486_v13, %v2255_v36  ;;  %v2478_v10 = vld [vmem:[#allocation2 + $0x26c] sm:$0xf0] }
  0x93   : > { %4049 = vst [vmem:[#allocation78_spill] sm:$0xff] %v3247_v11  ;;  %v2263_v37 = vld [vmem:[#allocation2 + $0x2f8] sm:$0xf0]  ;;  %v2470_v22 = vld [vmem:[#allocation2 + $0x234] sm:$0xf] }
  0x94   : > { %1104 = vmatpush.bf16.msra.mxu0 %v3232_v4  ;;  %4050 = vst [vmem:[#allocation79_spill] sm:$0xff] %v3250_v49  ;;  %1117 = vmatpush.bf16.msra.mxu1 %v3236_v31  ;;  %v2197_v19 = vld [vmem:[#allocation2 + $0x238] sm:$0xf]  ;;  %v2125_v13 = vld [vmem:[#allocation2 + $0x1b0] sm:$0xf] }
  0x95   : > { %1130 = vmatpush.bf16.msra.mxu2 %v3238_v48  ;;  %4051 = vst [vmem:[#allocation80_spill] sm:$0xff] %v3256_v42  ;;  %v2479_v63 = vld [vmem:[#allocation2 + $0x274] sm:$0xf0]  ;;  %v2462_v36 = vld [vmem:[#allocation2 + $0x1ec] sm:$0xf0] }
  0x96   : > { %1143 = vmatpush.bf16.msra.mxu3 %v3241_v39  ;;  %4052 = vst [vmem:[#allocation81_spill] sm:$0xff] %v3260_v30  ;;  %v2261_v39 = vld [vmem:[#allocation2 + $0x2b8] sm:$0xf] }
  0x97   : > { %4053 = vst [vmem:[#allocation82_spill] sm:$0xff] %v3262_v18  ;;  %1105 = vmatmul.bf16.vlgmr.msra.gmra.mxu0 %v3089_v53  ;;  %1118 = vmatmul.bf16.vlgmr.msra.gmra.mxu1 %v3089_v53 }
  0x98   : > { %1149 = vmatpush.bf16.msrb.mxu0 %v3243_v20  ;;  %1162 = vmatpush.bf16.msrb.mxu1 %v3245_v26  ;;  %4054 = vst [vmem:[#allocation83_spill] sm:$0xff] %v3265_v40  ;;  %v2495_v20 = vld [vmem:[#allocation2 + $0x2f4] sm:$0xf0]  ;;  %v2199_v26 = vld [vmem:[#allocation2 + $0x278] sm:$0xf0] }
  0x99   : > { %1175 = vmatpush.bf16.msrb.mxu2 %v3247_v11  ;;  %1144 = vmatmul.bf16.vlgmr.msra.gmra.mxu3 %v3089_v53  ;;  %4055 = vst [vmem:[#allocation84_spill] sm:$0xff] %v3271_v15  ;;  %v3278_v0 = vor.u32 %v2495_v20, %v2261_v39  ;;  %v2471_v11 = vld [vmem:[#allocation2 + $0x23c] sm:$0xf]  ;;  %v3290_v39 = vor.u32 %v2479_v63, %v2197_v19  ;;  %v2061_v19 = vld [vmem:[#allocation2 + $0x130] sm:$0xf] }
  0x9a   : > { %1188 = vmatpush.bf16.msrb.mxu3 %v3250_v49  ;;  %1131 = vmatmul.bf16.vlgmr.msra.gmra.mxu2 %v3089_v53  ;;  %4056 = vst [vmem:[#allocation85_spill] sm:$0xff] %v3276_v41  ;;  %v3281_v49 = vor.u32 %v2487_v1, %v2263_v37  ;;  %v2454_v1 = vld [vmem:[#allocation2 + $0x1b4] sm:$0xf]  ;;  %v3293_v37 = vor.u32 %v2471_v11, %v2199_v26  ;;  %v2446_v26 = vld [vmem:[#allocation2 + $0x16c] sm:$0xf0] }
  0x9b   : > { %4057 = vst [vmem:[#allocation86_spill] sm:$0xff] %v3278_v0  ;;  %v2438_v11 = vld [vmem:[#allocation2 + $0x134] sm:$0xf] }
  0x9c   : > { %1150 = vmatpush.bf16.msrb.mxu0 %v3256_v42  ;;  %1163 = vmatpush.bf16.msrb.mxu1 %v3260_v30  ;;  %4058 = vst [vmem:[#allocation87_spill] sm:$0xff] %v3281_v49  ;;  %v2191_v42 = vld [vmem:[#allocation2 + $0x270] sm:$0xf0]  ;;  %v3284_v30 = vor.u32 %v2478_v10, %v2189_v24  ;;  %v2455_v24 = vld [vmem:[#allocation2 + $0x1bc] sm:$0xf] }
  0x9d   : > { %1176 = vmatpush.bf16.msrb.mxu2 %v3262_v18  ;;  %v3288_v20 = vor.u32 %v2470_v22, %v2191_v42  ;;  %4061 = vst [vmem:[#allocation90_spill] sm:$0xff] %v3290_v39  ;;  %v2133_v18 = vld [vmem:[#allocation2 + $0x1b8] sm:$0xf]  ;;  %v2135_v10 = vld [vmem:[#allocation2 + $0x1f8] sm:$0xf0] }
  0x9e   : > { %1189 = vmatpush.bf16.msrb.mxu3 %v3265_v40  ;;  %4059 = vst [vmem:[#allocation88_spill] sm:$0xff] %v3284_v30  ;;  %v2127_v40 = vld [vmem:[#allocation2 + $0x1f0] sm:$0xf0]  ;;  %v3305_v63 = vor.u32 %v2455_v24, %v2135_v10 }
  0x9f   : > { %4060 = vst [vmem:[#allocation89_spill] sm:$0xff] %v3288_v20  ;;  %v3300_v42 = vor.u32 %v2454_v1, %v2127_v40  ;;  %v2430_v1 = vld [vmem:[#allocation2 + $0xec] sm:$0xf0]  ;;  %v2422_v24 = vld [vmem:[#allocation2 + $0xb4] sm:$0xf] }
  0xa0   : > { %1151 = vmatpush.bf16.msrb.mxu0 %v3271_v15  ;;  %1164 = vmatpush.bf16.msrb.mxu1 %v3276_v41  ;;  %4062 = vst [vmem:[#allocation91_spill] sm:$0xff] %v3293_v37  ;;  %v2463_v15 = vld [vmem:[#allocation2 + $0x1f4] sm:$0xf0]  ;;  %v3296_v41 = vor.u32 %v2462_v36, %v2125_v13  ;;  %v2439_v13 = vld [vmem:[#allocation2 + $0x13c] sm:$0xf] }
  0xa1   : > { %1177 = vmatpush.bf16.msrb.mxu2 %v3278_v0  ;;  %4064 = vst [vmem:[#allocation93_spill] sm:$0xff] %v3300_v42  ;;  %v3302_v22 = vor.u32 %v2463_v15, %v2133_v18  ;;  %v2069_v0 = vld [vmem:[#allocation2 + $0x138] sm:$0xf]  ;;  %v2071_v36 = vld [vmem:[#allocation2 + $0x178] sm:$0xf0] }
  0xa2   : > { %1190 = vmatpush.bf16.msrb.mxu3 %v3281_v49  ;;  %4063 = vst [vmem:[#allocation92_spill] sm:$0xff] %v3296_v41  ;;  %v2063_v49 = vld [vmem:[#allocation2 + $0x170] sm:$0xf0]  ;;  %v1997_v15 = vld [vmem:[#allocation2 + $0xb0] sm:$0xf]  ;;  %v3317_v10 = vor.u32 %v2439_v13, %v2071_v36 }
  0xa3   : > { %4065 = vst [vmem:[#allocation94_spill] sm:$0xff] %v3302_v22  ;;  %v3312_v18 = vor.u32 %v2438_v11, %v2063_v49  ;;  %v2414_v11 = vld [vmem:[#allocation2 + $0x6c] sm:$0xf0]  ;;  %v2406_v13 = vld [vmem:[#allocation2 + $0x34] sm:$0xf] }
  0xa4   : > { %1152 = vmatpush.bf16.msrb.mxu0 %v3284_v30  ;;  %1165 = vmatpush.bf16.msrb.mxu1 %v3288_v20  ;;  %4066 = vst [vmem:[#allocation95_spill] sm:$0xff] %v3305_v63  ;;  %v2447_v30 = vld [vmem:[#allocation2 + $0x174] sm:$0xf0]  ;;  %v3308_v20 = vor.u32 %v2446_v26, %v2061_v19  ;;  %v2423_v19 = vld [vmem:[#allocation2 + $0xbc] sm:$0xf] }
  0xa5   : > { %1178 = vmatpush.bf16.msrb.mxu2 %v3290_v39  ;;  %4068 = vst [vmem:[#allocation97_spill] sm:$0xff] %v3312_v18  ;;  %v3314_v40 = vor.u32 %v2447_v30, %v2069_v0  ;;  %v2005_v39 = vld [vmem:[#allocation2 + $0xb8] sm:$0xf]  ;;  %v2007_v26 = vld [vmem:[#allocation2 + $0xf8] sm:$0xf0] }
  0xa6   : > { %1191 = vmatpush.bf16.msrb.mxu3 %v3293_v37  ;;  %4067 = vst [vmem:[#allocation96_spill] sm:$0xff] %v3308_v20  ;;  %v1999_v37 = vld [vmem:[#allocation2 + $0xf0] sm:$0xf0]  ;;  %v1933_v0 = vld [vmem:[#allocation2 + $0x30] sm:$0xf]  ;;  %v3329_v36 = vor.u32 %v2423_v19, %v2007_v26  ;;  %v4074_v26 = vld [vmem:[#allocation20_spill] sm:$0xff] }
  0xa7   : > { %v3324_v49 = vor.u32 %v2422_v24, %v1999_v37  ;;  %v4072_v24 = vld [vmem:[#allocation18_spill] sm:$0xff]  ;;  %v4073_v19 = vld [vmem:[#allocation19_spill] sm:$0xff] }
  0xa8   : > { %1153 = vmatpush.bf16.msrb.mxu0 %v3296_v41  ;;  %1166 = vmatpush.bf16.msrb.mxu1 %v3300_v42  ;;  %v2431_v41 = vld [vmem:[#allocation2 + $0xf4] sm:$0xf0]  ;;  %v3320_v42 = vor.u32 %v2430_v1, %v1997_v15  ;;  %v2407_v15 = vld [vmem:[#allocation2 + $0x3c] sm:$0xf] }
  0xa9   : > { %1179 = vmatpush.bf16.msrb.mxu2 %v3302_v22  ;;  %v3326_v30 = vor.u32 %v2431_v41, %v2005_v39  ;;  %v1941_v22 = vld [vmem:[#allocation2 + $0x38] sm:$0xf]  ;;  %v1943_v1 = vld [vmem:[#allocation2 + $0x78] sm:$0xf0] }
  0xaa   : > { %1192 = vmatpush.bf16.msrb.mxu3 %v3305_v63  ;;  %v1935_v63 = vld [vmem:[#allocation2 + $0x70] sm:$0xf0]  ;;  %v3341_v37 = vor.u32 %v2407_v15, %v1943_v1  ;;  %v4078_v15 = vld [vmem:[#allocation24_spill] sm:$0xff]  ;;  %v4079_v1 = vld [vmem:[#allocation25_spill] sm:$0xff] }
  0xab   : > { %v3336_v41 = vor.u32 %v2406_v13, %v1935_v63  ;;  %v4071_v63 = vld [vmem:[#allocation17_spill] sm:$0xff]  ;;  %v4077_v13 = vld [vmem:[#allocation23_spill] sm:$0xff] }
  0xac   : > { %1154 = vmatpush.bf16.msrb.mxu0 %v3308_v20  ;;  %1167 = vmatpush.bf16.msrb.mxu1 %v3312_v18  ;;  %v2415_v20 = vld [vmem:[#allocation2 + $0x74] sm:$0xf0]  ;;  %v3332_v18 = vor.u32 %v2414_v11, %v1933_v0  ;;  %v4075_v0 = vld [vmem:[#allocation21_spill] sm:$0xff]  ;;  %v4076_v11 = vld [vmem:[#allocation22_spill] sm:$0xff] }
  0xad   : > { %1180 = vmatpush.bf16.msrb.mxu2 %v3314_v40  ;;  %v3338_v39 = vor.u32 %v2415_v20, %v1941_v22  ;;  %v4069_v20 = vld [vmem:[#allocation15_spill] sm:$0xff]  ;;  %v4070_v22 = vld [vmem:[#allocation16_spill] sm:$0xff] }
  0xae   : > { %1193 = vmatpush.bf16.msrb.mxu3 %v3317_v10 }
  0xb0   : > { %1155 = vmatpush.bf16.msrb.mxu0 %v3320_v42  ;;  %1168 = vmatpush.bf16.msrb.mxu1 %v3324_v49 }
  0xb1   : > { %1181 = vmatpush.bf16.msrb.mxu2 %v3326_v30 }
  0xb2   : > { %1194 = vmatpush.bf16.msrb.mxu3 %v3329_v36 }
  0xb4   : > { %1156 = vmatpush.bf16.msrb.mxu0 %v3332_v18  ;;  %1169 = vmatpush.bf16.msrb.mxu1 %v3336_v41 }
  0xb5   : > { %1182 = vmatpush.bf16.msrb.mxu2 %v3338_v39 }
  0xb6   : > { %1195 = vmatpush.bf16.msrb.mxu3 %v3341_v37 }
  0xb7   : > { %1157 = vmatmul.bf16.vlgmr.msrb.gmra.mxu0 %v3089_v53  ;;  %1170 = vmatmul.bf16.vlgmr.msrb.gmra.mxu1 %v3089_v53 }
  0xb8   : > { %1201 = vmatpush.bf16.msra.mxu0 %v2941_v3  ;;  %1214 = vmatpush.bf16.msra.mxu1 %v2943_v7 }
  0xb9   : > { %1227 = vmatpush.bf16.msra.mxu2 %v2945_v8  ;;  %1196 = vmatmul.bf16.vlgmr.msrb.gmra.mxu3 %v3089_v53 }
  0xba   : > { %1240 = vmatpush.bf16.msra.mxu3 %v2948_v12  ;;  %1183 = vmatmul.bf16.vlgmr.msrb.gmra.mxu2 %v3089_v53 }
  0xbc   : > { %1202 = vmatpush.bf16.msra.mxu0 %v2952_v16  ;;  %1215 = vmatpush.bf16.msra.mxu1 %v2954_v17 }
  0xbd   : > { %1228 = vmatpush.bf16.msra.mxu2 %v2957_v21 }
  0xbe   : > { %1241 = vmatpush.bf16.msra.mxu3 %v2959_v25 }
  0xc0   : > { %1203 = vmatpush.bf16.msra.mxu0 %v2962_v29  ;;  %1216 = vmatpush.bf16.msra.mxu1 %v2966_v33 }
  0xc1   : > { %1229 = vmatpush.bf16.msra.mxu2 %v2968_v34 }
  0xc2   : > { %1242 = vmatpush.bf16.msra.mxu3 %v2971_v38 }
  0xc4   : > { %1204 = vmatpush.bf16.msra.mxu0 %v2974_v44  ;;  %1217 = vmatpush.bf16.msra.mxu1 %v2978_v45 }
  0xc5   : > { %1230 = vmatpush.bf16.msra.mxu2 %v2980_v46 }
  0xc6   : > { %1243 = vmatpush.bf16.msra.mxu3 %v2983_v50 }
  0xc8   : > { %1205 = vmatpush.bf16.msra.mxu0 %v2986_v56  ;;  %1218 = vmatpush.bf16.msra.mxu1 %v2990_v57 }
  0xc9   : > { %1231 = vmatpush.bf16.msra.mxu2 %v2992_v58 }
  0xca   : > { %1244 = vmatpush.bf16.msra.mxu3 %v2995_v62 }
  0xcc   : > { %1206 = vmatpush.bf16.msra.mxu0 %v2998_v5  ;;  %1219 = vmatpush.bf16.msra.mxu1 %v3002_v6 }
  0xcd   : > { %1232 = vmatpush.bf16.msra.mxu2 %v3004_v9 }
  0xce   : > { %1245 = vmatpush.bf16.msra.mxu3 %v3007_v14 }
  0xd0   : > { %1207 = vmatpush.bf16.msra.mxu0 %v3010_v23  ;;  %1220 = vmatpush.bf16.msra.mxu1 %v3014_v27 }
  0xd1   : > { %1233 = vmatpush.bf16.msra.mxu2 %v3016_v28 }
  0xd2   : > { %1246 = vmatpush.bf16.msra.mxu3 %v3019_v35 }
  0xd4   : > { %1208 = vmatpush.bf16.msra.mxu0 %v3022_v43  ;;  %1221 = vmatpush.bf16.msra.mxu1 %v3026_v51 }
  0xd5   : > { %1234 = vmatpush.bf16.msra.mxu2 %v3028_v52 }
  0xd6   : > { %1247 = vmatpush.bf16.msra.mxu3 %v3031_v55 }
  0xd7   : > { %1209 = vmatmul.bf16.vlgmr.msra.gmra.mxu0 %v3067_v54  ;;  %1222 = vmatmul.bf16.vlgmr.msra.gmra.mxu1 %v3067_v54 }
  0xd8   : > { %1253 = vmatpush.bf16.msrb.mxu0 %v3033_v59  ;;  %1266 = vmatpush.bf16.msrb.mxu1 %v3035_v60 }
  0xd9   : > { %1279 = vmatpush.bf16.msrb.mxu2 %v3037_v61  ;;  %1248 = vmatmul.bf16.vlgmr.msra.gmra.mxu3 %v3067_v54  ;;  %v4129_v61 = vld [vmem:[#allocation68_spill] sm:$0xff] }
  0xda   : > { %1292 = vmatpush.bf16.msrb.mxu3 %v3040_v2  ;;  %1235 = vmatmul.bf16.vlgmr.msra.gmra.mxu2 %v3067_v54  ;;  %v4100_v2 = vld [vmem:[#allocation43_spill] sm:$0xff] }
  0xdc   : > { %1254 = vmatpush.bf16.msrb.mxu0 %v4069_v20  ;;  %1267 = vmatpush.bf16.msrb.mxu1 %v4070_v22  ;;  %v4080_v20 = vld [vmem:[#allocation27_spill] sm:$0xff]  ;;  %v4081_v22 = vld [vmem:[#allocation28_spill] sm:$0xff] }
  0xdd   : > { %1280 = vmatpush.bf16.msrb.mxu2 %v4071_v63  ;;  %v4082_v63 = vld [vmem:[#allocation29_spill] sm:$0xff] }
  0xde   : > { %1293 = vmatpush.bf16.msrb.mxu3 %v4072_v24  ;;  %v4083_v24 = vld [vmem:[#allocation30_spill] sm:$0xff] }
  0xe0   : > { %1255 = vmatpush.bf16.msrb.mxu0 %v4073_v19  ;;  %1268 = vmatpush.bf16.msrb.mxu1 %v4074_v26  ;;  %v4084_v19 = vld [vmem:[#allocation31_spill] sm:$0xff]  ;;  %v4085_v26 = vld [vmem:[#allocation32_spill] sm:$0xff] }
  0xe1   : > { %1281 = vmatpush.bf16.msrb.mxu2 %v4075_v0  ;;  %v3408_v0 = vpop.f32.mrf.mxu0 }
  0xe2   : > { %1294 = vmatpush.bf16.msrb.mxu3 %v4076_v11  ;;  %4086 = vst [vmem:[#allocation98_spill] sm:$0xff] %v3408_v0  ;;  %v4087_v11 = vld [vmem:[#allocation33_spill] sm:$0xff]  ;;  %v4097_v0 = vld [vmem:[#allocation40_spill] sm:$0xff] }
  0xe4   : > { %1256 = vmatpush.bf16.msrb.mxu0 %v4077_v13  ;;  %1269 = vmatpush.bf16.msrb.mxu1 %v4078_v15  ;;  %v4088_v13 = vld [vmem:[#allocation34_spill] sm:$0xff]  ;;  %v3412_v15 = vpop.f32.mrf.mxu1 }
  0xe5   : > { %1282 = vmatpush.bf16.msrb.mxu2 %v4079_v1  ;;  %4089 = vst [vmem:[#allocation99_spill] sm:$0xff] %v3412_v15  ;;  %v4090_v1 = vld [vmem:[#allocation35_spill] sm:$0xff]  ;;  %v4099_v15 = vld [vmem:[#allocation42_spill] sm:$0xff] }
  0xe6   : > { %1295 = vmatpush.bf16.msrb.mxu3 %v4080_v20  ;;  %v4091_v20 = vld [vmem:[#allocation36_spill] sm:$0xff] }
  0xe8   : > { %1257 = vmatpush.bf16.msrb.mxu0 %v4081_v22  ;;  %1270 = vmatpush.bf16.msrb.mxu1 %v4082_v63  ;;  %v4092_v22 = vld [vmem:[#allocation37_spill] sm:$0xff]  ;;  %v4093_v63 = vld [vmem:[#allocation38_spill] sm:$0xff] }
  0xe9   : > { %1283 = vmatpush.bf16.msrb.mxu2 %v4083_v24  ;;  %v3418_v24 = vpop.f32.mrf.mxu2 }
  0xea   : > { %1296 = vmatpush.bf16.msrb.mxu3 %v4084_v19  ;;  %4094 = vst [vmem:[#allocation100_spill] sm:$0xff] %v3418_v24  ;;  %v4095_v19 = vld [vmem:[#allocation39_spill] sm:$0xff] }
  0xeb   : > { %v4104_v24 = vld [vmem:[#allocation47_spill] sm:$0xff] }
  0xec   : > { %1258 = vmatpush.bf16.msrb.mxu0 %v4085_v26  ;;  %1271 = vmatpush.bf16.msrb.mxu1 %v4087_v11  ;;  %v3421_v26 = vpop.f32.mrf.mxu3  ;;  %v1004_v11 = vpop.f32.mrf.mxu0 }
  0xed   : > { %1284 = vmatpush.bf16.msrb.mxu2 %v4088_v13  ;;  %4096 = vst [vmem:[#allocation101_spill] sm:$0xff] %v3421_v26  ;;  %v4098_v13 = vld [vmem:[#allocation41_spill] sm:$0xff] }
  0xee   : > { %1297 = vmatpush.bf16.msrb.mxu3 %v4090_v1  ;;  %v1017_v1 = vpop.f32.mrf.mxu1 }
  0xef   : > { %v4105_v1 = vld [vmem:[#allocation48_spill] sm:$0xff] }
  0xf0   : > { %1259 = vmatpush.bf16.msrb.mxu0 %v4091_v20  ;;  %1272 = vmatpush.bf16.msrb.mxu1 %v4092_v22  ;;  %v4101_v20 = vld [vmem:[#allocation44_spill] sm:$0xff]  ;;  %v4102_v22 = vld [vmem:[#allocation45_spill] sm:$0xff] }
  0xf1   : > { %1285 = vmatpush.bf16.msrb.mxu2 %v4093_v63  ;;  %v4103_v63 = vld [vmem:[#allocation46_spill] sm:$0xff]  ;;  %v1030_v11 = vpop.f32.mrf.mxu2 }
  0xf2   : > { %1298 = vmatpush.bf16.msrb.mxu3 %v4095_v19  ;;  %v4124_v19 = vld [vmem:[#allocation63_spill] sm:$0xff] }
  0xf4   : > { %1260 = vmatpush.bf16.msrb.mxu0 %v4097_v0  ;;  %1273 = vmatpush.bf16.msrb.mxu1 %v4098_v13  ;;  %v1043_v26 = vpop.f32.mrf.mxu3  ;;  %v4112_v13 = vld [vmem:[#allocation54_spill] sm:$0xff]  ;;  %v4114_v0 = vld [vmem:[#allocation55_spill] sm:$0xff] }
  0xf5   : > { %1286 = vmatpush.bf16.msrb.mxu2 %v4099_v15  ;;  %v4111_v15 = vld [vmem:[#allocation53_spill] sm:$0xff] }
  0xf6   : > { %1299 = vmatpush.bf16.msrb.mxu3 %v4100_v2  ;;  %v4106_v2 = vld [vmem:[#allocation49_spill] sm:$0xff]  ;;  %v3444_v11 = vpop.f32.mrf.mxu1 }
  0xf7   : > { %1261 = vmatmul.bf16.vlgmr.msrb.gmra.mxu0 %v3067_v54  ;;  %1274 = vmatmul.bf16.vlgmr.msrb.gmra.mxu1 %v3067_v54  ;;  %4113 = vst [vmem:[#allocation103_spill] sm:$0xff] %v3444_v11  ;;  %v4116_v26 = vld [vmem:[#allocation57_spill] sm:$0xff]  ;;  %v4123_v11 = vld [vmem:[#allocation62_spill] sm:$0xff] }
  0xf8   : > { %1305 = vmatpush.bf16.msra.mxu0 %v4101_v20  ;;  %1318 = vmatpush.bf16.msra.mxu1 %v4102_v22  ;;  %v4107_v20 = vld [vmem:[#allocation50_spill] sm:$0xff]  ;;  %v4108_v22 = vld [vmem:[#allocation51_spill] sm:$0xff] }
  0xf9   : > { %1331 = vmatpush.bf16.msra.mxu2 %v4103_v63  ;;  %1300 = vmatmul.bf16.vlgmr.msrb.gmra.mxu3 %v3067_v54  ;;  %v4109_v63 = vld [vmem:[#allocation52_spill] sm:$0xff] }
  0xfa   : > { %1344 = vmatpush.bf16.msra.mxu3 %v4104_v24  ;;  %1287 = vmatmul.bf16.vlgmr.msrb.gmra.mxu2 %v3067_v54  ;;  %v3440_v24 = vpop.f32.mrf.mxu0 }
  0xfb   : > { %4110 = vst [vmem:[#allocation102_spill] sm:$0xff] %v3440_v24  ;;  %v4121_v24 = vld [vmem:[#allocation60_spill] sm:$0xff] }
  0xfc   : > { %1306 = vmatpush.bf16.msra.mxu0 %v4105_v1  ;;  %1319 = vmatpush.bf16.msra.mxu1 %v4106_v2  ;;  %v4115_v1 = vld [vmem:[#allocation56_spill] sm:$0xff]  ;;  %v4117_v2 = vld [vmem:[#allocation58_spill] sm:$0xff] }
  0xfd   : > { %1332 = vmatpush.bf16.msra.mxu2 %v4107_v20  ;;  %v3450_v20 = vpop.f32.mrf.mxu2 }
  0xfe   : > { %1345 = vmatpush.bf16.msra.mxu3 %v4108_v22  ;;  %4118 = vst [vmem:[#allocation104_spill] sm:$0xff] %v3450_v20  ;;  %v4119_v22 = vld [vmem:[#allocation59_spill] sm:$0xff] }
 0x100   : > { %1307 = vmatpush.bf16.msra.mxu0 %v4109_v63  ;;  %1320 = vmatpush.bf16.msra.mxu1 %v4111_v15  ;;  %v3453_v63 = vpop.f32.mrf.mxu3 }
 0x101   : > { %1333 = vmatpush.bf16.msra.mxu2 %v4112_v13  ;;  %4120 = vst [vmem:[#allocation105_spill] sm:$0xff] %v3453_v63  ;;  %v4122_v13 = vld [vmem:[#allocation61_spill] sm:$0xff] }
 0x102   : > { %1346 = vmatpush.bf16.msra.mxu3 %v4114_v0  ;;  %v1056_v15 = vpop.f32.mrf.mxu0  ;;  %v1069_v0 = vpop.f32.mrf.mxu1 }
 0x103   : > { %v4130_v15 = vld [vmem:[#allocation69_spill] sm:$0xff]  ;;  %v4131_v0 = vld [vmem:[#allocation75_spill] sm:$0xff] }
 0x104   : > { %1308 = vmatpush.bf16.msra.mxu0 %v4115_v1  ;;  %1321 = vmatpush.bf16.msra.mxu1 %v4116_v26  ;;  %v4125_v1 = vld [vmem:[#allocation64_spill] sm:$0xff]  ;;  %v4126_v26 = vld [vmem:[#allocation65_spill] sm:$0xff] }
 0x105   : > { %1334 = vmatpush.bf16.msra.mxu2 %v4117_v2  ;;  %v4127_v2 = vld [vmem:[#allocation66_spill] sm:$0xff]  ;;  %v1082_v20 = vpop.f32.mrf.mxu2 }
 0x106   : > { %1347 = vmatpush.bf16.msra.mxu3 %v4119_v22  ;;  %v4128_v22 = vld [vmem:[#allocation67_spill] sm:$0xff]  ;;  %v4132_v20 = vld [vmem:[#allocation76_spill] sm:$0xff] }
 0x108   : > { %1309 = vmatpush.bf16.msra.mxu0 %v4121_v24  ;;  %1322 = vmatpush.bf16.msra.mxu1 %v4122_v13  ;;  %v1095_v63 = vpop.f32.mrf.mxu3 }
 0x109   : > { %1335 = vmatpush.bf16.msra.mxu2 %v4123_v11  ;;  %v4134_v63 = vld [vmem:[#allocation78_spill] sm:$0xff] }
 0x10a   : > { %1348 = vmatpush.bf16.msra.mxu3 %v4124_v19 }
 0x10c   : > { %1310 = vmatpush.bf16.msra.mxu0 %v4125_v1  ;;  %1323 = vmatpush.bf16.msra.mxu1 %v4126_v26 }
 0x10d   : > { %1336 = vmatpush.bf16.msra.mxu2 %v4127_v2  ;;  %v4155_v2 = vld [vmem:[#allocation95_spill] sm:$0xff] }
 0x10e   : > { %1349 = vmatpush.bf16.msra.mxu3 %v4128_v22  ;;  %v4133_v22 = vld [vmem:[#allocation77_spill] sm:$0xff] }
 0x110   : > { %1311 = vmatpush.bf16.msra.mxu0 %v4129_v61  ;;  %1324 = vmatpush.bf16.msra.mxu1 %v4130_v15  ;;  %v4135_v61 = vld [vmem:[#allocation79_spill] sm:$0xff]  ;;  %v4146_v15 = vld [vmem:[#allocation88_spill] sm:$0xff] }
 0x111   : > { %1337 = vmatpush.bf16.msra.mxu2 %v3226_v32  ;;  %v4145_v32 = vld [vmem:[#allocation87_spill] sm:$0xff] }
 0x112   : > { %1350 = vmatpush.bf16.msra.mxu3 %v3229_v47 }
 0x114   : > { %1312 = vmatpush.bf16.msra.mxu0 %v3232_v4  ;;  %1325 = vmatpush.bf16.msra.mxu1 %v3236_v31  ;;  %v4136_v31 = vld [vmem:[#allocation80_spill] sm:$0xff]  ;;  %v4143_v4 = vld [vmem:[#allocation86_spill] sm:$0xff]  ;;  %v3488_v47 = vpop.f32.mrf.mxu1 }
 0x115   : > { %1338 = vmatpush.bf16.msra.mxu2 %v3238_v48  ;;  %v4137_v48 = vld [vmem:[#allocation81_spill] sm:$0xff]  ;;  %4144 = vst [vmem:[#allocation61_spill] sm:$0xff] %v3488_v47  ;;  %v4154_v47 = vld [vmem:[#allocation94_spill] sm:$0xff] }
 0x116   : > { %1351 = vmatpush.bf16.msra.mxu3 %v4131_v0  ;;  %v4138_v0 = vld [vmem:[#allocation82_spill] sm:$0xff] }
 0x117   : > { %1313 = vmatmul.bf16.vlgmr.msra.gmra.mxu0 %v3067_v54  ;;  %1326 = vmatmul.bf16.vlgmr.msra.gmra.mxu1 %v3067_v54 }
 0x118   : > { %1357 = vmatpush.bf16.msrb.mxu0 %v4132_v20  ;;  %1370 = vmatpush.bf16.msrb.mxu1 %v4133_v22  ;;  %v4139_v20 = vld [vmem:[#allocation83_spill] sm:$0xff]  ;;  %v4140_v22 = vld [vmem:[#allocation84_spill] sm:$0xff] }
 0x119   : > { %1383 = vmatpush.bf16.msrb.mxu2 %v4134_v63  ;;  %1352 = vmatmul.bf16.vlgmr.msra.gmra.mxu3 %v3067_v54  ;;  %v3484_v63 = vpop.f32.mrf.mxu0 }
 0x11a   : > { %1396 = vmatpush.bf16.msrb.mxu3 %v4135_v61  ;;  %1339 = vmatmul.bf16.vlgmr.msra.gmra.mxu2 %v3067_v54  ;;  %4141 = vst [vmem:[#allocation60_spill] sm:$0xff] %v3484_v63  ;;  %v4142_v61 = vld [vmem:[#allocation85_spill] sm:$0xff]  ;;  %v4152_v63 = vld [vmem:[#allocation92_spill] sm:$0xff] }
 0x11c   : > { %1358 = vmatpush.bf16.msrb.mxu0 %v4136_v31  ;;  %1371 = vmatpush.bf16.msrb.mxu1 %v4137_v48  ;;  %v4147_v31 = vld [vmem:[#allocation89_spill] sm:$0xff]  ;;  %v4148_v48 = vld [vmem:[#allocation90_spill] sm:$0xff] }
 0x11d   : > { %1384 = vmatpush.bf16.msrb.mxu2 %v4138_v0  ;;  %v3494_v0 = vpop.f32.mrf.mxu2 }
 0x11e   : > { %1397 = vmatpush.bf16.msrb.mxu3 %v4139_v20  ;;  %4149 = vst [vmem:[#allocation62_spill] sm:$0xff] %v3494_v0  ;;  %v4150_v20 = vld [vmem:[#allocation91_spill] sm:$0xff] }
 0x120   : > { %1359 = vmatpush.bf16.msrb.mxu0 %v4140_v22  ;;  %1372 = vmatpush.bf16.msrb.mxu1 %v4142_v61  ;;  %v3497_v22 = vpop.f32.mrf.mxu3 }
 0x121   : > { %1385 = vmatpush.bf16.msrb.mxu2 %v4143_v4  ;;  %4151 = vst [vmem:[#allocation63_spill] sm:$0xff] %v3497_v22  ;;  %v1108_v61 = vpop.f32.mrf.mxu0  ;;  %v4153_v4 = vld [vmem:[#allocation93_spill] sm:$0xff] }
 0x122   : > { %1398 = vmatpush.bf16.msrb.mxu3 %v4145_v32  ;;  %v1121_v32 = vpop.f32.mrf.mxu1  ;;  %v4175_v61 = vld [vmem:[#allocation30_spill] sm:$0xff] }
 0x123   : > { %v4178_v32 = vld [vmem:[#allocation33_spill] sm:$0xff] }
 0x124   : > { %1360 = vmatpush.bf16.msrb.mxu0 %v4146_v15  ;;  %1373 = vmatpush.bf16.msrb.mxu1 %v4147_v31  ;;  %v4156_v15 = vld [vmem:[#allocation96_spill] sm:$0xff]  ;;  %v4157_v31 = vld [vmem:[#allocation97_spill] sm:$0xff] }
 0x125   : > { %1386 = vmatpush.bf16.msrb.mxu2 %v4148_v48  ;;  %v1134_v0 = vpop.f32.mrf.mxu2 }
 0x126   : > { %1399 = vmatpush.bf16.msrb.mxu3 %v4150_v20  ;;  %v4180_v0 = vld [vmem:[#allocation35_spill] sm:$0xff] }
 0x128   : > { %1361 = vmatpush.bf16.msrb.mxu0 %v4152_v63  ;;  %1374 = vmatpush.bf16.msrb.mxu1 %v4153_v4  ;;  %v1147_v22 = vpop.f32.mrf.mxu3 }
 0x129   : > { %1387 = vmatpush.bf16.msrb.mxu2 %v4154_v47  ;;  %v4179_v22 = vld [vmem:[#allocation34_spill] sm:$0xff] }
 0x12a   : > { %1400 = vmatpush.bf16.msrb.mxu3 %v4155_v2 }
 0x12c   : > { %1362 = vmatpush.bf16.msrb.mxu0 %v4156_v15  ;;  %1375 = vmatpush.bf16.msrb.mxu1 %v4157_v31 }
 0x12d   : > { %1388 = vmatpush.bf16.msrb.mxu2 %v3314_v40 }
 0x12e   : > { %1401 = vmatpush.bf16.msrb.mxu3 %v3317_v10 }
 0x130   : > { %1363 = vmatpush.bf16.msrb.mxu0 %v3320_v42  ;;  %1376 = vmatpush.bf16.msrb.mxu1 %v3324_v49 }
 0x131   : > { %1389 = vmatpush.bf16.msrb.mxu2 %v3326_v30 }
 0x132   : > { %1402 = vmatpush.bf16.msrb.mxu3 %v3329_v36 }
 0x134   : > { %1364 = vmatpush.bf16.msrb.mxu0 %v3332_v18  ;;  %1377 = vmatpush.bf16.msrb.mxu1 %v3336_v41 }
 0x135   : > { %1390 = vmatpush.bf16.msrb.mxu2 %v3338_v39 }
 0x136   : > { %1403 = vmatpush.bf16.msrb.mxu3 %v3341_v37 }
 0x137   : > { %1365 = vmatmul.bf16.vlgmr.msrb.gmra.mxu0 %v3067_v54  ;;  %1378 = vmatmul.bf16.vlgmr.msrb.gmra.mxu1 %v3067_v54 }
 0x138   : > { %1409 = vmatpush.bf16.msra.mxu0 %v2941_v3  ;;  %1422 = vmatpush.bf16.msra.mxu1 %v2943_v7  ;;  %v3527_v3 = vpop.f32.mrf.mxu0  ;;  %v3530_v7 = vpop.f32.mrf.mxu1 }
 0x139   : > { %1435 = vmatpush.bf16.msra.mxu2 %v2945_v8  ;;  %1404 = vmatmul.bf16.vlgmr.msrb.gmra.mxu3 %v3067_v54 }
 0x13a   : > { %1448 = vmatpush.bf16.msra.mxu3 %v2948_v12  ;;  %1391 = vmatmul.bf16.vlgmr.msrb.gmra.mxu2 %v3067_v54  ;;  %v4176_v54 = vld [vmem:[#allocation31_spill] sm:$0xff] }
 0x13c   : > { %1410 = vmatpush.bf16.msra.mxu0 %v2952_v16  ;;  %1423 = vmatpush.bf16.msra.mxu1 %v2954_v17  ;;  %v3541_v12 = vpop.f32.mrf.mxu3 }
 0x13d   : > { %1436 = vmatpush.bf16.msra.mxu2 %v2957_v21  ;;  %v3539_v8 = vpop.f32.mrf.mxu2  ;;  %v350_v21 = vunpack.c.l.bf16 %v3089_v53  ;;  %v4177_v53 = vld [vmem:[#allocation32_spill] sm:$0xff] }
 0x13e   : > { %1449 = vmatpush.bf16.msra.mxu3 %v2959_v25 }
 0x140   : > { %1411 = vmatpush.bf16.msra.mxu0 %v2962_v29  ;;  %1424 = vmatpush.bf16.msra.mxu1 %v2966_v33  ;;  %v1160_v16 = vpop.f32.mrf.mxu0  ;;  %v1173_v17 = vpop.f32.mrf.mxu1  ;;  %v4158_v33 = vld [vmem:[#allocation26_spill] sm:$0xff] }
 0x141   : > { %1437 = vmatpush.bf16.msra.mxu2 %v2968_v34  ;;  %v351_v34 = vsub.f32 %v4158_v33, %v350_v21  ;;  %v4181_v21 = vld [vmem:[#allocation36_spill] sm:$0xff]  ;;  %v4184_v33 = vld [vmem:[#allocation39_spill] sm:$0xff] }
 0x142   : > { %1450 = vmatpush.bf16.msra.mxu3 %v2971_v38 }
 0x143   : > { %v3558_v38 = vpack.c.bf16 %v351_v34, %v351_v34  ;;  %v4185_v34 = vld [vmem:[#allocation40_spill] sm:$0xff] }
 0x144   : > { %1412 = vmatpush.bf16.msra.mxu0 %v2974_v44  ;;  %1425 = vmatpush.bf16.msra.mxu1 %v2978_v45  ;;  %v1199_v29 = vpop.f32.mrf.mxu3  ;;  %v4159_v44 = vld [vmem:[#allocation13_spill] sm:$0xff]  ;;  %v4160_v45 = vld [vmem:[#allocation14_spill] sm:$0xff] }
 0x145   : > { %1438 = vmatpush.bf16.msra.mxu2 %v2980_v46  ;;  %v1186_v25 = vpop.f32.mrf.mxu2  ;;  %v4161_v46 = vld [vmem:[#allocation15_spill] sm:$0xff]  ;;  %v4183_v29 = vld [vmem:[#allocation38_spill] sm:$0xff] }
 0x146   : > { %1451 = vmatpush.bf16.msra.mxu3 %v2983_v50  ;;  %v4162_v50 = vld [vmem:[#allocation16_spill] sm:$0xff]  ;;  %v4182_v25 = vld [vmem:[#allocation37_spill] sm:$0xff] }
 0x148   : > { %1413 = vmatpush.bf16.msra.mxu0 %v2986_v56  ;;  %1426 = vmatpush.bf16.msra.mxu1 %v2990_v57  ;;  %v4163_v56 = vld [vmem:[#allocation17_spill] sm:$0xff]  ;;  %v4164_v57 = vld [vmem:[#allocation18_spill] sm:$0xff] }
 0x149   : > { %1439 = vmatpush.bf16.msra.mxu2 %v2992_v58 }
 0x14a   : > { %1452 = vmatpush.bf16.msra.mxu3 %v2995_v62  ;;  %v4165_v62 = vld [vmem:[#allocation19_spill] sm:$0xff] }
 0x14c   : > { %1414 = vmatpush.bf16.msra.mxu0 %v2998_v5  ;;  %1427 = vmatpush.bf16.msra.mxu1 %v3002_v6  ;;  %v4166_v6 = vld [vmem:[#allocation20_spill] sm:$0xff] }
 0x14d   : > { %1440 = vmatpush.bf16.msra.mxu2 %v3004_v9  ;;  %v4167_v9 = vld [vmem:[#allocation21_spill] sm:$0xff] }
 0x14e   : > { %1453 = vmatpush.bf16.msra.mxu3 %v3007_v14  ;;  %v4168_v14 = vld [vmem:[#allocation22_spill] sm:$0xff] }
 0x150   : > { %1415 = vmatpush.bf16.msra.mxu0 %v3010_v23  ;;  %1428 = vmatpush.bf16.msra.mxu1 %v3014_v27  ;;  %v4169_v23 = vld [vmem:[#allocation23_spill] sm:$0xff]  ;;  %v4170_v27 = vld [vmem:[#allocation24_spill] sm:$0xff] }
 0x151   : > { %1441 = vmatpush.bf16.msra.mxu2 %v3016_v28  ;;  %v4171_v28 = vld [vmem:[#allocation25_spill] sm:$0xff] }
 0x152   : > { %1454 = vmatpush.bf16.msra.mxu3 %v3019_v35  ;;  %v4172_v35 = vld [vmem:[#allocation27_spill] sm:$0xff] }
 0x154   : > { %1416 = vmatpush.bf16.msra.mxu0 %v3022_v43  ;;  %1429 = vmatpush.bf16.msra.mxu1 %v3026_v51  ;;  %v3575_v58 = vpop.f32.mrf.mxu0  ;;  %v3578_v5 = vpop.f32.mrf.mxu1 }
 0x155   : > { %1442 = vmatpush.bf16.msra.mxu2 %v3028_v52 }
 0x156   : > { %1455 = vmatpush.bf16.msra.mxu3 %v3031_v55  ;;  %v4173_v55 = vld [vmem:[#allocation28_spill] sm:$0xff] }
 0x157   : > { %1417 = vmatmul.bf16.vlgmr.msra.gmra.mxu0 %v3558_v38  ;;  %1430 = vmatmul.bf16.vlgmr.msra.gmra.mxu1 %v3558_v38 }
 0x158   : > { %1461 = vmatpush.bf16.msrb.mxu0 %v3033_v59  ;;  %1474 = vmatpush.bf16.msrb.mxu1 %v3035_v60  ;;  %v4174_v60 = vld [vmem:[#allocation29_spill] sm:$0xff] }
 0x159   : > { %1487 = vmatpush.bf16.msrb.mxu2 %v4159_v44  ;;  %1456 = vmatmul.bf16.vlgmr.msra.gmra.mxu3 %v3558_v38  ;;  %v4186_v44 = vld [vmem:[#allocation41_spill] sm:$0xff] }
 0x15a   : > { %1500 = vmatpush.bf16.msrb.mxu3 %v4160_v45  ;;  %1443 = vmatmul.bf16.vlgmr.msra.gmra.mxu2 %v3558_v38  ;;  %v4187_v45 = vld [vmem:[#allocation42_spill] sm:$0xff] }
 0x15c   : > { %1462 = vmatpush.bf16.msrb.mxu0 %v4161_v46  ;;  %1475 = vmatpush.bf16.msrb.mxu1 %v4162_v50  ;;  %v3589_v51 = vpop.f32.mrf.mxu3  ;;  %v1212_v52 = vpop.f32.mrf.mxu0  ;;  %v4188_v46 = vld [vmem:[#allocation43_spill] sm:$0xff]  ;;  %v4189_v50 = vld [vmem:[#allocation44_spill] sm:$0xff] }
 0x15d   : > { %1488 = vmatpush.bf16.msrb.mxu2 %v4163_v56  ;;  %v3587_v43 = vpop.f32.mrf.mxu2  ;;  %v1225_v59 = vpop.f32.mrf.mxu1  ;;  %v4190_v56 = vld [vmem:[#allocation45_spill] sm:$0xff] }
 0x15e   : > { %1501 = vmatpush.bf16.msrb.mxu3 %v4164_v57  ;;  %v4191_v57 = vld [vmem:[#allocation46_spill] sm:$0xff]  ;;  %v4198_v52 = vld [vmem:[#allocation53_spill] sm:$0xff]  ;;  %v4200_v59 = vld [vmem:[#allocation55_spill] sm:$0xff] }
 0x160   : > { %1463 = vmatpush.bf16.msrb.mxu0 %v4165_v62  ;;  %1476 = vmatpush.bf16.msrb.mxu1 %v4166_v6  ;;  %v4192_v62 = vld [vmem:[#allocation47_spill] sm:$0xff]  ;;  %v4193_v6 = vld [vmem:[#allocation48_spill] sm:$0xff] }
 0x161   : > { %1489 = vmatpush.bf16.msrb.mxu2 %v4167_v9  ;;  %v4194_v9 = vld [vmem:[#allocation49_spill] sm:$0xff] }
 0x162   : > { %1502 = vmatpush.bf16.msrb.mxu3 %v4168_v14  ;;  %v4195_v14 = vld [vmem:[#allocation50_spill] sm:$0xff] }
 0x164   : > { %1464 = vmatpush.bf16.msrb.mxu0 %v4169_v23  ;;  %1477 = vmatpush.bf16.msrb.mxu1 %v4170_v27  ;;  %v1251_v17 = vpop.f32.mrf.mxu3  ;;  %v4196_v23 = vld [vmem:[#allocation51_spill] sm:$0xff] }
 0x165   : > { %1490 = vmatpush.bf16.msrb.mxu2 %v4171_v28  ;;  %v1238_v16 = vpop.f32.mrf.mxu2  ;;  %v4197_v28 = vld [vmem:[#allocation52_spill] sm:$0xff]  ;;  %v4205_v17 = vld [vmem:[#allocation66_spill] sm:$0xff] }
 0x166   : > { %1503 = vmatpush.bf16.msrb.mxu3 %v4172_v35 }
 0x168   : > { %1465 = vmatpush.bf16.msrb.mxu0 %v4173_v55  ;;  %1478 = vmatpush.bf16.msrb.mxu1 %v4174_v60  ;;  %v4199_v55 = vld [vmem:[#allocation54_spill] sm:$0xff]  ;;  %v4201_v60 = vld [vmem:[#allocation56_spill] sm:$0xff] }
 0x169   : > { %1491 = vmatpush.bf16.msrb.mxu2 %v4175_v61  ;;  %v4202_v61 = vld [vmem:[#allocation57_spill] sm:$0xff] }
 0x16a   : > { %1504 = vmatpush.bf16.msrb.mxu3 %v4176_v54  ;;  %v4203_v54 = vld [vmem:[#allocation58_spill] sm:$0xff] }
 0x16c   : > { %1466 = vmatpush.bf16.msrb.mxu0 %v4177_v53  ;;  %1479 = vmatpush.bf16.msrb.mxu1 %v4178_v32  ;;  %v4204_v53 = vld [vmem:[#allocation59_spill] sm:$0xff] }
 0x16d   : > { %1492 = vmatpush.bf16.msrb.mxu2 %v4179_v22 }
 0x16e   : > { %1505 = vmatpush.bf16.msrb.mxu3 %v4180_v0 }
 0x170   : > { %1467 = vmatpush.bf16.msrb.mxu0 %v4181_v21  ;;  %1480 = vmatpush.bf16.msrb.mxu1 %v4182_v25  ;;  %v4206_v21 = vld [vmem:[#allocation67_spill] sm:$0xff] }
 0x171   : > { %1493 = vmatpush.bf16.msrb.mxu2 %v4183_v29 }
 0x172   : > { %1506 = vmatpush.bf16.msrb.mxu3 %v4184_v33  ;;  %v4207_v33 = vld [vmem:[#allocation68_spill] sm:$0xff] }
 0x174   : > { %1468 = vmatpush.bf16.msrb.mxu0 %v4185_v34  ;;  %1481 = vmatpush.bf16.msrb.mxu1 %v4186_v44  ;;  %v3619_v27 = vpop.f32.mrf.mxu0  ;;  %v3622_v35 = vpop.f32.mrf.mxu1  ;;  %v4209_v34 = vld [vmem:[#allocation70_spill] sm:$0xff]  ;;  %v4215_v44 = vld [vmem:[#allocation76_spill] sm:$0xff] }
 0x175   : > { %1494 = vmatpush.bf16.msrb.mxu2 %v4187_v45  ;;  %v4216_v45 = vld [vmem:[#allocation77_spill] sm:$0xff] }
 0x176   : > { %1507 = vmatpush.bf16.msrb.mxu3 %v4188_v46  ;;  %v4217_v46 = vld [vmem:[#allocation78_spill] sm:$0xff] }
 0x177   : > { %1469 = vmatmul.bf16.vlgmr.msrb.gmra.mxu0 %v3558_v38  ;;  %1482 = vmatmul.bf16.vlgmr.msrb.gmra.mxu1 %v3558_v38 }
 0x178   : > { %1513 = vmatpush.bf16.msra.mxu0 %v4189_v50  ;;  %1526 = vmatpush.bf16.msra.mxu1 %v4190_v56  ;;  %v4218_v50 = vld [vmem:[#allocation79_spill] sm:$0xff]  ;;  %v4219_v56 = vld [vmem:[#allocation80_spill] sm:$0xff] }
 0x179   : > { %1539 = vmatpush.bf16.msra.mxu2 %v4191_v57  ;;  %1508 = vmatmul.bf16.vlgmr.msrb.gmra.mxu3 %v3558_v38  ;;  %v4220_v57 = vld [vmem:[#allocation81_spill] sm:$0xff] }
 0x17a   : > { %1552 = vmatpush.bf16.msra.mxu3 %v4192_v62  ;;  %1495 = vmatmul.bf16.vlgmr.msrb.gmra.mxu2 %v3558_v38  ;;  %v4221_v62 = vld [vmem:[#allocation82_spill] sm:$0xff] }
 0x17c   : > { %1514 = vmatpush.bf16.msra.mxu0 %v4193_v6  ;;  %1527 = vmatpush.bf16.msra.mxu1 %v4194_v9  ;;  %v3633_v22 = vpop.f32.mrf.mxu3  ;;  %v1264_v0 = vpop.f32.mrf.mxu0  ;;  %v4222_v6 = vld [vmem:[#allocation83_spill] sm:$0xff] }
 0x17d   : > { %1540 = vmatpush.bf16.msra.mxu2 %v4195_v14  ;;  %v3631_v32 = vpop.f32.mrf.mxu2  ;;  %v1277_v16 = vpop.f32.mrf.mxu1  ;;  %v4223_v14 = vld [vmem:[#allocation84_spill] sm:$0xff] }
 0x17e   : > { %1553 = vmatpush.bf16.msra.mxu3 %v4196_v23 }
 0x180   : > { %1515 = vmatpush.bf16.msra.mxu0 %v4197_v28  ;;  %1528 = vmatpush.bf16.msra.mxu1 %v4198_v52  ;;  %v4224_v28 = vld [vmem:[#allocation85_spill] sm:$0xff]  ;;  %v4225_v52 = vld [vmem:[#allocation86_spill] sm:$0xff] }
 0x181   : > { %1541 = vmatpush.bf16.msra.mxu2 %v4199_v55  ;;  %v4226_v55 = vld [vmem:[#allocation87_spill] sm:$0xff] }
 0x182   : > { %1554 = vmatpush.bf16.msra.mxu3 %v4200_v59  ;;  %v4227_v59 = vld [vmem:[#allocation88_spill] sm:$0xff] }
 0x184   : > { %1516 = vmatpush.bf16.msra.mxu0 %v4201_v60  ;;  %1529 = vmatpush.bf16.msra.mxu1 %v4202_v61  ;;  %v1303_v29 = vpop.f32.mrf.mxu3  ;;  %v4228_v60 = vld [vmem:[#allocation89_spill] sm:$0xff] }
 0x185   : > { %1542 = vmatpush.bf16.msra.mxu2 %v4203_v54  ;;  %v1290_v25 = vpop.f32.mrf.mxu2 }
 0x186   : > { %1555 = vmatpush.bf16.msra.mxu3 %v4204_v53 }
 0x188   : > { %1517 = vmatpush.bf16.msra.mxu0 %v4121_v24  ;;  %1530 = vmatpush.bf16.msra.mxu1 %v4122_v13  ;;  %v4208_v24 = vld [vmem:[#allocation69_spill] sm:$0xff]  ;;  %v4210_v13 = vld [vmem:[#allocation71_spill] sm:$0xff] }
 0x189   : > { %1543 = vmatpush.bf16.msra.mxu2 %v4123_v11  ;;  %v4211_v11 = vld [vmem:[#allocation72_spill] sm:$0xff] }
 0x18a   : > { %1556 = vmatpush.bf16.msra.mxu3 %v4124_v19  ;;  %v4212_v19 = vld [vmem:[#allocation73_spill] sm:$0xff] }
 0x18c   : > { %1518 = vmatpush.bf16.msra.mxu0 %v4125_v1  ;;  %1531 = vmatpush.bf16.msra.mxu1 %v4126_v26  ;;  %v4213_v1 = vld [vmem:[#allocation74_spill] sm:$0xff]  ;;  %v4214_v26 = vld [vmem:[#allocation75_spill] sm:$0xff] }
 0x18d   : > { %1544 = vmatpush.bf16.msra.mxu2 %v4205_v17 }
 0x18e   : > { %1557 = vmatpush.bf16.msra.mxu3 %v4206_v21 }
 0x190   : > { %1519 = vmatpush.bf16.msra.mxu0 %v4207_v33  ;;  %1532 = vmatpush.bf16.msra.mxu1 %v4208_v24  ;;  %v4231_v33 = vld [vmem:[#allocation100_spill] sm:$0xff] }
 0x191   : > { %1545 = vmatpush.bf16.msra.mxu2 %v4209_v34  ;;  %v1237_v24 = vadd.f32 %v3587_v43, %v4231_v33  ;;  %v4236_v33 = vld [vmem:[#allocation105_spill] sm:$0xff] }
 0x192   : > { %1558 = vmatpush.bf16.msra.mxu3 %v4210_v13  ;;  %v4232_v13 = vld [vmem:[#allocation101_spill] sm:$0xff] }
 0x194   : > { %1520 = vmatpush.bf16.msra.mxu0 %v4211_v11  ;;  %1533 = vmatpush.bf16.msra.mxu1 %v4212_v19  ;;  %v3663_v9 = vpop.f32.mrf.mxu0  ;;  %v3666_v23 = vpop.f32.mrf.mxu1  ;;  %v1250_v11 = vadd.f32 %v3589_v51, %v4232_v13 }
 0x195   : > { %1546 = vmatpush.bf16.msra.mxu2 %v4213_v1 }
 0x196   : > { %1559 = vmatpush.bf16.msra.mxu3 %v4214_v26 }
 0x197   : > { %1521 = vmatmul.bf16.vlgmr.msra.gmra.mxu0 %v3558_v38  ;;  %1534 = vmatmul.bf16.vlgmr.msra.gmra.mxu1 %v3558_v38 }
 0x198   : > { %1565 = vmatpush.bf16.msrb.mxu0 %v4215_v44  ;;  %1578 = vmatpush.bf16.msrb.mxu1 %v4216_v45 }
 0x199   : > { %1591 = vmatpush.bf16.msrb.mxu2 %v4217_v46  ;;  %1560 = vmatmul.bf16.vlgmr.msra.gmra.mxu3 %v3558_v38 }
 0x19a   : > { %1604 = vmatpush.bf16.msrb.mxu3 %v4218_v50  ;;  %1547 = vmatmul.bf16.vlgmr.msra.gmra.mxu2 %v3558_v38 }
 0x19c   : > { %1566 = vmatpush.bf16.msrb.mxu0 %v4219_v56  ;;  %1579 = vmatpush.bf16.msrb.mxu1 %v4220_v57  ;;  %v3677_v54 = vpop.f32.mrf.mxu3  ;;  %v1316_v53 = vpop.f32.mrf.mxu0 }
 0x19d   : > { %1592 = vmatpush.bf16.msrb.mxu2 %v4221_v62  ;;  %v3675_v61 = vpop.f32.mrf.mxu2  ;;  %v1329_v0 = vpop.f32.mrf.mxu1 }
 0x19e   : > { %1605 = vmatpush.bf16.msrb.mxu3 %v4222_v6 }
 0x1a0   : > { %1567 = vmatpush.bf16.msrb.mxu0 %v4223_v14  ;;  %1580 = vmatpush.bf16.msrb.mxu1 %v4224_v28 }
 0x1a1   : > { %1593 = vmatpush.bf16.msrb.mxu2 %v4225_v52 }
 0x1a2   : > { %1606 = vmatpush.bf16.msrb.mxu3 %v4226_v55 }
 0x1a4   : > { %1568 = vmatpush.bf16.msrb.mxu0 %v4227_v59  ;;  %1581 = vmatpush.bf16.msrb.mxu1 %v4228_v60 }
 0x1a5   : > { %1594 = vmatpush.bf16.msrb.mxu2 %v4148_v48  ;;  %v1342_v48 = vpop.f32.mrf.mxu2 }
 0x1a6   : > { %1607 = vmatpush.bf16.msrb.mxu3 %v4150_v20  ;;  %v1355_v20 = vpop.f32.mrf.mxu3 }
 0x1a8   : > { %1569 = vmatpush.bf16.msrb.mxu0 %v4152_v63  ;;  %1582 = vmatpush.bf16.msrb.mxu1 %v4153_v4 }
 0x1a9   : > { %1595 = vmatpush.bf16.msrb.mxu2 %v4154_v47 }
 0x1aa   : > { %1608 = vmatpush.bf16.msrb.mxu3 %v4155_v2 }
 0x1ac   : > { %1570 = vmatpush.bf16.msrb.mxu0 %v4156_v15  ;;  %1583 = vmatpush.bf16.msrb.mxu1 %v4157_v31 }
 0x1ad   : > { %1596 = vmatpush.bf16.msrb.mxu2 %v3314_v40 }
 0x1ae   : > { %1609 = vmatpush.bf16.msrb.mxu3 %v3317_v10 }
 0x1b0   : > { %1571 = vmatpush.bf16.msrb.mxu0 %v3320_v42  ;;  %1584 = vmatpush.bf16.msrb.mxu1 %v3324_v49  ;;  %v3707_v49 = vld [vmem:[#allocation5] sm:$0xff] }
 0x1b1   : > { %1597 = vmatpush.bf16.msrb.mxu2 %v3326_v30  ;;  %v4229_v30 = vld [vmem:[#allocation98_spill] sm:$0xff]  ;;  %v1638_v63 = vperm.slane %v3707_v49, 1  ;;  %v1640_v1 = vperm.slane %v3707_v49, 3 }
 0x1b2   : > { %1610 = vmatpush.bf16.msrb.mxu3 %v3329_v36  ;;  %v1211_v36 = vadd.f32 %v3575_v58, %v4229_v30  ;;  %v1639_v58 = vperm.slane %v3707_v49, 2  ;;  %v4234_v30 = vld [vmem:[#allocation103_spill] sm:$0xff] }
 0x1b4   : > { %1572 = vmatpush.bf16.msrb.mxu0 %v3332_v18  ;;  %1585 = vmatpush.bf16.msrb.mxu1 %v3336_v41  ;;  %v3699_v2 = vpop.f32.mrf.mxu0  ;;  %v3701_v47 = vpop.f32.mrf.mxu1  ;;  %v1637_v41 = vperm.slane %v3707_v49, 0 }
 0x1b5   : > { %1598 = vmatpush.bf16.msrb.mxu2 %v3338_v39  ;;  %v4230_v39 = vld [vmem:[#allocation99_spill] sm:$0xff] }
 0x1b6   : > { %1611 = vmatpush.bf16.msrb.mxu3 %v3341_v37  ;;  %v1224_v37 = vadd.f32 %v3578_v5, %v4230_v39  ;;  %v1642_v39 = vperm.slane %v3707_v49, 5 }
 0x1b7   : > { %1573 = vmatmul.bf16.vlgmr.msrb.gmra.mxu0 %v3558_v38  ;;  %1586 = vmatmul.bf16.vlgmr.msrb.gmra.mxu1 %v3558_v38 }
 0x1b8   : > { %1599 = vmatmul.bf16.vlgmr.msrb.gmra.mxu2 %v3558_v38 }
 0x1b9   : > { %1612 = vmatmul.bf16.vlgmr.msrb.gmra.mxu3 %v3558_v38 }
 0x1bc   : > { %v3705_v31 = vpop.f32.mrf.mxu3  ;;  %v1368_v42 = vpop.f32.mrf.mxu0 }
 0x1bd   : > { %v3703_v4 = vpop.f32.mrf.mxu2  ;;  %v1381_v18 = vpop.f32.mrf.mxu1 }
 0x1be   : > { %v4233_v18 = vld [vmem:[#allocation102_spill] sm:$0xff] }
 0x1c4   : > { %v1407_v10 = vpop.f32.mrf.mxu3 }
 0x1c5   : > { %v1394_v40 = vpop.f32.mrf.mxu2  ;;  %v1641_v10 = vperm.slane %v3707_v49, 4 }
 0x1c6   : > { %v1263_v40 = vadd.f32 %v3619_v27, %v4233_v18  ;;  %v1643_v27 = vperm.slane %v3707_v49, 6 }
 0x1d4   : > { %v1418_v15 = vpop.f32.mrf.mxu0  ;;  %v1431_v16 = vpop.f32.mrf.mxu1 }
 0x1d5   : > { %v1617_v38 = vadd.f32 %v1418_v15, %v1211_v36  ;;  %v1618_v17 = vadd.f32 %v1431_v16, %v1224_v37  ;;  %v1276_v36 = vadd.f32 %v3622_v35, %v4234_v30 }
 0x1d7   : > { %v1669_v21 = vsub.f32 %v1617_v38, %v1637_v41  ;;  %v1670_v25 = vsub.f32 %v1618_v17, %v1638_v63 }
 0x1d9   : > { %v1685_v29 = vmul.f32 -0.64, %v1669_v21  ;;  %v1686_v34 = vmul.f32 -0.64, %v1670_v25 }
 0x1db   : > { %v1701_v5 = vmul.f32 %v1685_v29, %v1669_v21  ;;  %v1702_v26 = vmul.f32 %v1686_v34, %v1670_v25  ;;  %v4235_v21 = vld [vmem:[#allocation104_spill] sm:$0xff] }
 0x1dc   : > { %v1457_v45 = vpop.f32.mrf.mxu3  ;;  %v1420_v46 = vpop.f32.mrf.mxu0  ;;  %v1289_v25 = vadd.f32 %v3631_v32, %v4235_v21 }
 0x1dd   : > { %v1444_v19 = vpop.f32.mrf.mxu2  ;;  %v1717_v50 = vmul.f32 1.442695, %v1701_v5  ;;  %v1620_v56 = vadd.f32 %v1457_v45, %v1250_v11  ;;  %v1433_v57 = vpop.f32.mrf.mxu1  ;;  %v1719_v62 = vmul.f32 1.442695, %v1702_v26 }
 0x1de   : > { %v1619_v44 = vadd.f32 %v1444_v19, %v1237_v24  ;;  %v1302_v24 = vadd.f32 %v3633_v22, %v4236_v33 }
 0x1df   : > { %2598 = vpow2.f32 %v1717_v50  ;;  %v1672_v6 = vsub.f32 %v1620_v56, %v1640_v1 }
 0x1e0   : > { %v1671_v43 = vsub.f32 %v1619_v44, %v1639_v58  ;;  %2600 = vpow2.f32 %v1719_v62  ;;  %v1644_v58 = vperm.slane %v3707_v49, 7 }
 0x1e1   : > { %v1688_v28 = vmul.f32 -0.64, %v1672_v6 }
 0x1e2   : > { %v1687_v14 = vmul.f32 -0.64, %v1671_v43 }
 0x1e3   : > { %v1704_v52 = vmul.f32 %v1688_v28, %v1672_v6 }
 0x1e4   : > { %v1703_v51 = vmul.f32 %v1687_v14, %v1671_v43  ;;  %v1459_v60 = vpop.f32.mrf.mxu3 }
 0x1e5   : > { %v1446_v55 = vpop.f32.mrf.mxu2  ;;  %v2599_v53 = vpop.eup %2598  ;;  %v1723_v0 = vmul.f32 1.442695, %v1704_v52 }
 0x1e6   : > { %v1721_v59 = vmul.f32 1.442695, %v1703_v51  ;;  %v2601_v48 = vpop.eup %2600  ;;  %1749 = vst [vmem:[%s3722_s25] sm:$0xff] %v2599_v53  ;;  %v3744_v55 = vld [vmem:[#allocation5 + $0x8] sm:$0xff] }
 0x1e7   : > { %1750 = vst [vmem:[%s3722_s25 + $0x8] sm:$0xff] %v2601_v48  ;;  %v1645_v53 = vperm.slane %v3744_v55, 0 }
 0x1e8   : > { %2602 = vpow2.f32 %v1721_v59  ;;  %v4237_v59 = vld [vmem:[#allocation60_spill] sm:$0xff] }
 0x1e9   : > { %2604 = vpow2.f32 %v1723_v0  ;;  %v1315_v60 = vadd.f32 %v3663_v9, %v4237_v59  ;;  %v4238_v0 = vld [vmem:[#allocation61_spill] sm:$0xff]  ;;  %v1647_v9 = vperm.slane %v3744_v55, 2  ;;  %v1393_v59 = vadd.f32 %v3703_v4, %v3539_v8 }
 0x1ea   : > { %v1328_v48 = vadd.f32 %v3666_v23, %v4238_v0 }
 0x1ee   : > { %v2603_v20 = vpop.eup %2602 }
 0x1ef   : > { %v2605_v42 = vpop.eup %2604  ;;  %1751 = vst [vmem:[%s3722_s25 + $0x10] sm:$0xff] %v2603_v20 }
 0x1f0   : > { %1752 = vst [vmem:[%s3722_s25 + $0x18] sm:$0xff] %v2605_v42  ;;  %v1646_v42 = vperm.slane %v3744_v55, 1 }
 0x1f4   : > { %v1470_v41 = vpop.f32.mrf.mxu0  ;;  %v1483_v15 = vpop.f32.mrf.mxu1 }
 0x1f5   : > { %v1621_v37 = vadd.f32 %v1470_v41, %v1263_v40  ;;  %v1622_v63 = vadd.f32 %v1483_v15, %v1276_v36 }
 0x1f7   : > { %v1673_v38 = vsub.f32 %v1621_v37, %v1641_v10  ;;  %v1674_v16 = vsub.f32 %v1622_v63, %v1642_v39  ;;  %v4239_v39 = vld [vmem:[#allocation62_spill] sm:$0xff]  ;;  %v4240_v63 = vld [vmem:[#allocation63_spill] sm:$0xff] }
 0x1f8   : > { %v1341_v37 = vadd.f32 %v3675_v61, %v4239_v39 }
 0x1f9   : > { %v1689_v17 = vmul.f32 -0.64, %v1673_v38  ;;  %v1690_v29 = vmul.f32 -0.64, %v1674_v16 }
 0x1fb   : > { %v1705_v34 = vmul.f32 %v1689_v17, %v1673_v38  ;;  %v1706_v13 = vmul.f32 %v1690_v29, %v1674_v16  ;;  %v1354_v38 = vadd.f32 %v3677_v54, %v4240_v63  ;;  %v1648_v17 = vperm.slane %v3744_v55, 3 }
 0x1fc   : > { %v1509_v5 = vpop.f32.mrf.mxu3  ;;  %v1472_v19 = vpop.f32.mrf.mxu0 }
 0x1fd   : > { %v1496_v35 = vpop.f32.mrf.mxu2  ;;  %v1725_v1 = vmul.f32 1.442695, %v1705_v34  ;;  %v1624_v26 = vadd.f32 %v1509_v5, %v1302_v24  ;;  %v1485_v44 = vpop.f32.mrf.mxu1  ;;  %v1727_v45 = vmul.f32 1.442695, %v1706_v13 }
 0x1fe   : > { %v1623_v11 = vadd.f32 %v1496_v35, %v1289_v25 }
 0x1ff   : > { %2606 = vpow2.f32 %v1725_v1  ;;  %v1676_v46 = vsub.f32 %v1624_v26, %v1644_v58 }
 0x200   : > { %v1675_v32 = vsub.f32 %v1623_v11, %v1643_v27  ;;  %2608 = vpow2.f32 %v1727_v45 }
 0x201   : > { %v1692_v22 = vmul.f32 -0.64, %v1676_v46 }
 0x202   : > { %v1691_v50 = vmul.f32 -0.64, %v1675_v32 }
 0x203   : > { %v1708_v49 = vmul.f32 %v1692_v22, %v1676_v46  ;;  %v1367_v22 = vadd.f32 %v3699_v2, %v3527_v3  ;;  %v1651_v3 = vperm.slane %v3744_v55, 6  ;;  %v1406_v2 = vadd.f32 %v3705_v31, %v3541_v12 }
 0x204   : > { %v1707_v56 = vmul.f32 %v1691_v50, %v1675_v32  ;;  %v1511_v43 = vpop.f32.mrf.mxu3 }
 0x205   : > { %v1498_v57 = vpop.f32.mrf.mxu2  ;;  %v2607_v6 = vpop.eup %2606  ;;  %v1731_v14 = vmul.f32 1.442695, %v1708_v49  ;;  %v1380_v49 = vadd.f32 %v3701_v47, %v3530_v7  ;;  %v1652_v47 = vperm.slane %v3744_v55, 7 }
 0x206   : > { %v1729_v62 = vmul.f32 1.442695, %v1707_v56  ;;  %v2609_v28 = vpop.eup %2608  ;;  %1753 = vst [vmem:[%s3722_s25 + $0x20] sm:$0xff] %v2607_v6  ;;  %v1649_v56 = vperm.slane %v3744_v55, 4 }
 0x207   : > { %1754 = vst [vmem:[%s3722_s25 + $0x28] sm:$0xff] %v2609_v28 }
 0x208   : > { %2610 = vpow2.f32 %v1729_v62  ;;  %v1650_v62 = vperm.slane %v3744_v55, 5 }
 0x209   : > { %2612 = vpow2.f32 %v1731_v14 }
 0x20e   : > { %v2611_v51 = vpop.eup %2610 }
 0x20f   : > { %v2613_v52 = vpop.eup %2612  ;;  %1755 = vst [vmem:[%s3722_s25 + $0x30] sm:$0xff] %v2611_v51 }
 0x210   : > { %1756 = vst [vmem:[%s3722_s25 + $0x38] sm:$0xff] %v2613_v52 }
 0x214   : > { %v1522_v20 = vpop.f32.mrf.mxu0  ;;  %v1535_v40 = vpop.f32.mrf.mxu1 }
 0x215   : > { %v1625_v18 = vadd.f32 %v1522_v20, %v1315_v60  ;;  %v1626_v10 = vadd.f32 %v1535_v40, %v1328_v48 }
 0x217   : > { %v1677_v30 = vsub.f32 %v1625_v18, %v1645_v53  ;;  %v1678_v36 = vsub.f32 %v1626_v10, %v1646_v42 }
 0x219   : > { %v1693_v41 = vmul.f32 -0.64, %v1677_v30  ;;  %v1694_v15 = vmul.f32 -0.64, %v1678_v36 }
 0x21b   : > { %v1709_v16 = vmul.f32 %v1693_v41, %v1677_v30  ;;  %v1710_v21 = vmul.f32 %v1694_v15, %v1678_v36 }
 0x21c   : > { %v1561_v29 = vpop.f32.mrf.mxu3  ;;  %v1524_v27 = vpop.f32.mrf.mxu0 }
 0x21d   : > { %v1548_v23 = vpop.f32.mrf.mxu2  ;;  %v1733_v33 = vmul.f32 1.442695, %v1709_v16  ;;  %v1628_v24 = vadd.f32 %v1561_v29, %v1354_v38  ;;  %v1537_v34 = vpop.f32.mrf.mxu1  ;;  %v1735_v35 = vmul.f32 1.442695, %v1710_v21 }
 0x21e   : > { %v1627_v25 = vadd.f32 %v1548_v23, %v1341_v37 }
 0x21f   : > { %2614 = vpow2.f32 %v1733_v33  ;;  %v1680_v58 = vsub.f32 %v1628_v24, %v1648_v17 }
 0x220   : > { %v1679_v61 = vsub.f32 %v1627_v25, %v1647_v9  ;;  %2616 = vpow2.f32 %v1735_v35 }
 0x221   : > { %v1696_v54 = vmul.f32 -0.64, %v1680_v58 }
 0x222   : > { %v1695_v13 = vmul.f32 -0.64, %v1679_v61 }
 0x223   : > { %v1712_v5 = vmul.f32 %v1696_v54, %v1680_v58 }
 0x224   : > { %v1711_v11 = vmul.f32 %v1695_v13, %v1679_v61  ;;  %v1563_v26 = vpop.f32.mrf.mxu3 }
 0x225   : > { %v1550_v19 = vpop.f32.mrf.mxu2  ;;  %v2615_v44 = vpop.eup %2614  ;;  %v1739_v45 = vmul.f32 1.442695, %v1712_v5 }
 0x226   : > { %v1737_v1 = vmul.f32 1.442695, %v1711_v11  ;;  %v2617_v32 = vpop.eup %2616  ;;  %1757 = vst [vmem:[%s3722_s25 + $0x40] sm:$0xff] %v2615_v44 }
 0x227   : > { %1758 = vst [vmem:[%s3722_s25 + $0x48] sm:$0xff] %v2617_v32 }
 0x228   : > { %2618 = vpow2.f32 %v1737_v1 }
 0x229   : > { %2620 = vpow2.f32 %v1739_v45 }
 0x22e   : > { %v2619_v46 = vpop.eup %2618 }
 0x22f   : > { %v2621_v50 = vpop.eup %2620  ;;  %1759 = vst [vmem:[%s3722_s25 + $0x50] sm:$0xff] %v2619_v46 }
 0x230   : > { %1760 = vst [vmem:[%s3722_s25 + $0x58] sm:$0xff] %v2621_v50 }
 0x234   : > { %v1574_v57 = vpop.f32.mrf.mxu0  ;;  %v1587_v6 = vpop.f32.mrf.mxu1 }
 0x235   : > { %v1629_v43 = vadd.f32 %v1574_v57, %v1367_v22  ;;  %v1630_v14 = vadd.f32 %v1587_v6, %v1380_v49 }
 0x237   : > { %v1681_v28 = vsub.f32 %v1629_v43, %v1649_v56  ;;  %v1682_v51 = vsub.f32 %v1630_v14, %v1650_v62 }
 0x239   : > { %v1697_v52 = vmul.f32 -0.64, %v1681_v28  ;;  %v1698_v60 = vmul.f32 -0.64, %v1682_v51 }
 0x23b   : > { %v1713_v53 = vmul.f32 %v1697_v52, %v1681_v28  ;;  %v1600_v7 = vpop.f32.mrf.mxu2  ;;  %v1714_v0 = vmul.f32 %v1698_v60, %v1682_v51 }
 0x23c   : > { %v1631_v48 = vadd.f32 %v1600_v7, %v1393_v59  ;;  %v1613_v20 = vpop.f32.mrf.mxu3  ;;  %v1576_v42 = vpop.f32.mrf.mxu0 }
 0x23d   : > { %v1741_v18 = vmul.f32 1.442695, %v1713_v53  ;;  %v1632_v40 = vadd.f32 %v1613_v20, %v1406_v2  ;;  %v1589_v10 = vpop.f32.mrf.mxu1  ;;  %v1743_v30 = vmul.f32 1.442695, %v1714_v0 }
 0x23e   : > { %v1683_v8 = vsub.f32 %v1631_v48, %v1651_v3 }
 0x23f   : > { %2622 = vpow2.f32 %v1741_v18  ;;  %v1684_v4 = vsub.f32 %v1632_v40, %v1652_v47 }
 0x240   : > { %2624 = vpow2.f32 %v1743_v30  ;;  %v1699_v12 = vmul.f32 -0.64, %v1683_v8 }
 0x241   : > { %v1700_v31 = vmul.f32 -0.64, %v1684_v4 }
 0x242   : > { %v1715_v36 = vmul.f32 %v1699_v12, %v1683_v8 }
 0x243   : > { %v1716_v55 = vmul.f32 %v1700_v31, %v1684_v4  ;;  %v1602_v41 = vpop.f32.mrf.mxu2 }
 0x244   : > { %v1745_v39 = vmul.f32 1.442695, %v1715_v36  ;;  %v1615_v37 = vpop.f32.mrf.mxu3 }
 0x245   : > { %v2623_v15 = vpop.eup %2622  ;;  %v1747_v9 = vmul.f32 1.442695, %v1716_v55 }
 0x246   : > { %v2625_v63 = vpop.eup %2624  ;;  %1761 = vst [vmem:[%s3722_s25 + $0x60] sm:$0xff] %v2623_v15  ;;  %2626 = vpow2.f32 %v1745_v39 }
 0x247   : > { %1762 = vst [vmem:[%s3722_s25 + $0x68] sm:$0xff] %v2625_v63  ;;  %2628 = vpow2.f32 %v1747_v9 }
 0x24c   : > { %v2627_v38 = vpop.eup %2626 }
 0x24d   : > { %v2629_v16 = vpop.eup %2628  ;;  %1763 = vst [vmem:[%s3722_s25 + $0x70] sm:$0xff] %v2627_v38 }
 0x24e   : > { %1764 = vst [vmem:[%s3722_s25 + $0x78] sm:$0xff] %v2629_v16 }
 0x24f   : > { %2747 = shalt.err (!%p2744_p9)
}
 0x250   : > { %2539 = dma.vmem_to_hbm [thread:$0]  (%p2876_p12), %s1780_s30, 2048, %s1782_s5, %s1766_s19  }
 0x251 PF: > { %s1793_s22 = sand.u32 1, %s2782_s12   ;;  %p4241_p10 = scmp.ge.s32.totalorder %s2794_s15, 2 }
 0x252   : > { %s1794_s23 = scalar_lea.sflag [#allocation4], %s1793_s22 }
 0x253   : > { %p2553_p11 = pnand %p4241_p10, %p2895_p7 }
 0x255   : > { %p2554_p0 = pneg %p2553_p11 }
 0x257   : > { %2777 = dma.done.wait (%p2554_p0), %s1794_s23, 2048  }
 0x258   : > { %2779 = vsyncadd (%p2554_p0), %s1794_s23, 4294965248  ;;  %p15_p3 = scmp.ge.s32.totalorder %s2864_s4, 4   ;;  %s4242_s12 = smov %s2786_s13 }
 0x259   : > { %s4243_s13 = smov %s2790_s14  ;;  %s4244_s14 = smov %s2881_s8 }
 0x25a   : > { %s4245_s15 = smov %s2864_s4  ;;  %17 = sbr.rel (!%p15_p3) target bundleno = 5 (0x5), region = 84 }
 0x25f   :  { %1800 = vsyncpa [#allocation3], 1 }
 0x260   :  { %1802 = vsyncpa [#allocation3 + $0x1], 1 }
 0x261   :  { %1803 = vsyncpa [#allocation6], 1 }
 0x262   :  { %1804 = vsyncpa [#allocation4], 1 }
 0x263   :  { %1806 = vsyncpa [#allocation4 + $0x1], 1 }

</bundles_post_ra>
